<compile_context>
chip_gen: v6e
topology: v6e:2x2x1
jax: 0.10.0
libtpu: 0.0.40
codegen_flags: <defaults>
</compile_context>

<pallas_src>
import jax
import jax.numpy as jnp
from jax import lax
from jax.experimental import pallas as pl
from jax.experimental.pallas import tpu as pltpu

_EPS = 1e-5


def _round_up(n, m):
    return (n + m - 1) // m * m


def _fold_bn(gamma, beta, mean, var):
    scale = gamma / jnp.sqrt(var + _EPS)
    bias = beta - mean * scale
    return scale, bias


def _make_kernel(*, stride, has_expand, use_res, W, Wout, lanes):
    """lanes = lane-padded flat spatial size of ONE plane
    (H*W for stride 1, Hout*Wout for stride 2)."""

    def kernel(*refs):
        it = iter(refs)
        x_ref = next(it)          # (1, Cin, lanes) or (1, Cin, 4*lanes)  bf16
        masks_ref = next(it)      # (4|3, lanes) f32
        if has_expand:
            w1t_ref = next(it)    # (Chid, Cin)  bf16, BN1 scale folded
            b1_ref = next(it)     # (Chid, 1)    f32
        dwt_ref = next(it)        # (Chid, 9)    f32, BN2 scale folded
        b2_ref = next(it)         # (Chid, 1)    f32
        w2t_ref = next(it)        # (Cout, Chid) bf16, BN3 scale folded
        b3_ref = next(it)         # (Cout, 1)    f32
        o_ref = next(it)          # (1, Cout, lanes) f32

        # ---- 1x1 expand conv (+folded BN1) + ReLU6: bf16 MXU, f32 acc ----
        if has_expand:
            h = jnp.dot(w1t_ref[...], x_ref[0],
                        preferred_element_type=jnp.float32)
            h = jnp.clip(h + b1_ref[...], 0.0, 6.0)
        else:
            h = x_ref[0].astype(jnp.float32)

        dwt = dwt_ref[...]

        def w(k):                               # per-channel tap weight (Chid,1)
            return dwt[:, k:k + 1]

        def shifted(v, off):
            # shifted[p] == v[p + off] along the lane axis (XLU rotate); the
            # masks below zero every wrapped / out-of-row contribution.
            if off == 0:
                return v
            return pltpu.roll(v, shift=(-off) % lanes, axis=1)

        # ---- 3x3 depthwise conv (pad=1): 9 lane-rolled VPU multiply-adds ----
        if stride == 1:
            m_nl = masks_ref[0:1, :]   # zero input col W-1  (for kw=0 taps)
            m_nf = masks_ref[1:2, :]   # zero input col 0    (for kw=2 taps)
            m_rt = masks_ref[2:3, :]   # output row > 0      (for kh=0 taps)
            m_rb = masks_ref[3:4, :]   # output row < H-1    (for kh=2 taps)
            hv = (h * m_nl, h, h * m_nf)           # variant per kw

            def dw_row(kh):
                base = (kh - 1) * W
                return (w(kh * 3 + 0) * shifted(hv[0], base - 1)
                        + w(kh * 3 + 1) * shifted(hv[1], base)
                        + w(kh * 3 + 2) * shifted(hv[2], base + 1))

            acc = dw_row(1) + m_rt * dw_row(0) + m_rb * dw_row(2)
        else:
            # stride 2: h holds the 4 even/odd phase planes [A|B|C|D] of the
            # expanded activation (A=h[2i,2j], B=h[2i,2j+1], C=h[2i+1,2j],
            # D=h[2i+1,2j+1]), each `lanes` wide, already in output order.
            hA = h[:, 0 * lanes:1 * lanes]
            hB = h[:, 1 * lanes:2 * lanes]
            hC = h[:, 2 * lanes:3 * lanes]
            hD = h[:, 3 * lanes:4 * lanes]
            m_l = masks_ref[0:1, :]     # output col > 0
            m_t = masks_ref[1:2, :]     # output row > 0
            m_tl = masks_ref[2:3, :]    # both
            acc = (w(4) * hA + w(5) * hB + w(7) * hC + w(8) * hD
                   + m_l * (w(3) * shifted(hB, -1) + w(6) * shifted(hD, -1))
                   + m_t * (w(1) * shifted(hC, -Wout)
                            + w(2) * shifted(hD, -Wout))
                   + m_tl * (w(0) * shifted(hD, -(Wout + 1))))

        d = jnp.clip(acc + b2_ref[...], 0.0, 6.0)

        # ---- 1x1 project conv (+folded BN3) + bias: bf16 MXU, f32 acc ----
        o = jnp.dot(w2t_ref[...], d.astype(jnp.bfloat16),
                    preferred_element_type=jnp.float32)
        o = o + b3_ref[...]
        if use_res:
            o = o + x_ref[0].astype(jnp.float32)
        o_ref[0] = o

    return kernel


def inverted_residual_pallas(x_nchw, params, stride):
    """x_nchw: (N, Cin, H, W). Returns (N, Cout, Hout, Wout) float32."""
    N, Cin, H, W = x_nchw.shape
    has_expand = "w1" in params
    Chid = params["dw"].shape[1]
    Cout = params["w2"].shape[1]
    use_res = (stride == 1) and (Cin == Cout)

    # Fold BN (inference) scales into the conv weights; MXU weights in bf16.
    s2, b2 = _fold_bn(*params["bn2"])
    s3, b3 = _fold_bn(*params["bn3"])
    dwt = (params["dw"] * s2[None, :]).T.astype(jnp.float32)      # (Chid, 9)
    w2t = (params["w2"] * s3[None, :]).T.astype(jnp.bfloat16)     # (Cout, Chid)
    b2c = b2.reshape(Chid, 1).astype(jnp.float32)
    b3c = b3.reshape(Cout, 1).astype(jnp.float32)

    xf = x_nchw.astype(jnp.float32)

    if stride == 1:
        Hout, Wout = H, W
        P = H * W
        lanes = _round_up(P, 128)
        x_in = xf.reshape(N, Cin, P)
        col = jnp.arange(P, dtype=jnp.int32) % W
        row = jnp.arange(P, dtype=jnp.int32) // W
        masks = jnp.stack([col != W - 1, col != 0,
                           row != 0, row != H - 1]).astype(jnp.float32)
        if lanes > P:
            x_in = jnp.pad(x_in, ((0, 0), (0, 0), (0, lanes - P)))
            masks = jnp.pad(masks, ((0, 0), (0, lanes - P)))
        lanes_in = lanes
    else:
        if H % 2 or W % 2:
            raise NotImplementedError(
                "stride-2 InvertedResidual kernel assumes even H, W")
        Hout, Wout = H // 2, W // 2
        P = Hout * Wout
        lanes = _round_up(P, 128)
        xs = xf.reshape(N, Cin, H, W)
        phases = [xs[:, :, 0::2, 0::2], xs[:, :, 0::2, 1::2],
                  xs[:, :, 1::2, 0::2], xs[:, :, 1::2, 1::2]]
        phases = [p.reshape(N, Cin, P) for p in phases]
        if lanes > P:
            phases = [jnp.pad(p, ((0, 0), (0, 0), (0, lanes - P)))
                      for p in phases]
        x_in = jnp.concatenate(phases, axis=2)          # (N, Cin, 4*lanes)
        jj = jnp.arange(P, dtype=jnp.int32) % Wout
        ii = jnp.arange(P, dtype=jnp.int32) // Wout
        masks = jnp.stack([jj != 0, ii != 0,
                           (ii != 0) & (jj != 0)]).astype(jnp.float32)
        if lanes > P:
            masks = jnp.pad(masks, ((0, 0), (0, lanes - P)))
        lanes_in = 4 * lanes

    x_in = x_in.astype(jnp.bfloat16)

    const_args = [masks]
    if has_expand:
        s1, b1 = _fold_bn(*params["bn1"])
        w1t = (params["w1"] * s1[None, :]).T.astype(jnp.bfloat16)  # (Chid, Cin)
        b1c = b1.reshape(Chid, 1).astype(jnp.float32)
        const_args += [w1t, b1c]
    const_args += [dwt, b2c, w2t, b3c]

    kernel = _make_kernel(stride=stride, has_expand=has_expand, use_res=use_res,
                          W=W, Wout=Wout, lanes=lanes)

    # VMEM budget derived from the actual blocks: x/out double buffered,
    # constants counted twice (conservative), generous room for f32
    # intermediates, 2x headroom; capped at 48 MiB (safe on v7x's 64 MiB
    # physical VMEM, plenty on v5e/v6e).
    bytes_blocks = 2 * (Cin * lanes_in * 2 + Cout * lanes * 4)
    bytes_consts = 2 * sum(int(a.size) * a.dtype.itemsize for a in const_args)
    bytes_interm = 4 * (12 * Chid + 2 * Cout) * max(lanes_in, lanes)
    vmem_limit = int(min(max(2 * (bytes_blocks + bytes_consts + bytes_interm),
                             16 * 1024 * 1024), 48 * 1024 * 1024))

    flops = N * (2 * 9 * Chid * lanes + 2 * Chid * Cout * lanes)
    if has_expand:
        flops += N * 2 * Cin * Chid * lanes_in
    bytes_accessed = (int(x_in.size) * 2 + N * Cout * lanes * 4
                      + sum(int(a.size) * a.dtype.itemsize for a in const_args))

    def launch(single_buffer_consts):
        def const_spec(shape):
            zeros = (0,) * len(shape)
            if single_buffer_consts:
                # Constant operand: index_map is constant, nothing to prefetch,
                # one VMEM buffer is enough.
                return pl.BlockSpec(shape, lambda n, _z=zeros: _z,
                                    pipeline_mode=pl.Buffered(1))
            return pl.BlockSpec(shape, lambda n, _z=zeros: _z)

        in_specs = [pl.BlockSpec((1, Cin, lanes_in), lambda n: (n, 0, 0))]
        in_specs += [const_spec(tuple(a.shape)) for a in const_args]

        return pl.pallas_call(
            kernel,
            out_shape=jax.ShapeDtypeStruct((N, Cout, lanes), jnp.float32),
            grid_spec=pltpu.PrefetchScalarGridSpec(
                num_scalar_prefetch=0,
                grid=(N,),
                in_specs=in_specs,
                out_specs=pl.BlockSpec((1, Cout, lanes), lambda n: (n, 0, 0)),
            ),
            compiler_params=pltpu.CompilerParams(
                dimension_semantics=("parallel",),
                vmem_limit_bytes=vmem_limit),
            cost_estimate=pl.CostEstimate(flops=int(flops), transcendentals=0,
                                          bytes_accessed=int(bytes_accessed)),
        )(x_in, *const_args)

    try:
        out_flat = launch(single_buffer_consts=True)
    except Exception:
        # TODO(synk): pl.Buffered(1) (single-buffered constants) unsupported on
        # this jax/Mosaic build; fall back to default double buffering.
        out_flat = launch(single_buffer_consts=False)

    return out_flat[:, :, :P].reshape(N, Cout, Hout, Wout)


# ---------------- pure-JAX reference (exact, for correctness check) ----------
def inverted_residual_ref(x_nchw, params, stride):
    x = jnp.transpose(x_nchw, (0, 2, 3, 1)).astype(jnp.float32)  # NHWC
    Cin = x.shape[-1]
    Chid = params["dw"].shape[1]
    Cout = params["w2"].shape[1]
    dn = ("NHWC", "HWIO", "NHWC")
    prec = lax.Precision.HIGHEST
    s2, b2 = _fold_bn(*params["bn2"])
    s3, b3 = _fold_bn(*params["bn3"])

    h = x
    if "w1" in params:
        s1, b1 = _fold_bn(*params["bn1"])
        h = lax.conv_general_dilated(x, params["w1"].reshape(1, 1, Cin, Chid),
                                     (1, 1), [(0, 0), (0, 0)],
                                     dimension_numbers=dn, precision=prec)
        h = jnp.clip(h * s1 + b1, 0.0, 6.0)
    dw = params["dw"].reshape(3, 3, 1, Chid)
    d = lax.conv_general_dilated(h, dw, (stride, stride), [(1, 1), (1, 1)],
                                 dimension_numbers=dn, feature_group_count=Chid,
                                 precision=prec)
    d = jnp.clip(d * s2 + b2, 0.0, 6.0)
    o = lax.conv_general_dilated(d, params["w2"].reshape(1, 1, Chid, Cout),
                                 (1, 1), [(0, 0), (0, 0)],
                                 dimension_numbers=dn, precision=prec)
    o = o * s3 + b3
    if stride == 1 and Cin == Cout:
        o = o + x
    return jnp.transpose(o, (0, 3, 1, 2))


def make_params(key, inp, oup, expand_ratio):
    hidden = int(round(inp * expand_ratio))
    ks = jax.random.split(key, 6)

    def bn(k, c):
        kg, kb, km, kv = jax.random.split(k, 4)
        gamma = 1.0 + 0.1 * jax.random.normal(kg, (c,), jnp.float32)
        beta = 0.1 * jax.random.normal(kb, (c,), jnp.float32)
        mean = 0.1 * jax.random.normal(km, (c,), jnp.float32)
        var = 1.0 + 0.1 * jax.random.uniform(kv, (c,), jnp.float32)
        return (gamma, beta, mean, var)

    p = {
        "dw": jax.random.normal(ks[1], (9, hidden), jnp.float32) * 0.2,
        "w2": jax.random.normal(ks[2], (hidden, oup), jnp.float32) * 0.2,
        "bn2": bn(ks[4], hidden),
        "bn3": bn(ks[5], oup),
    }
    if expand_ratio != 1:
        p["w1"] = jax.random.normal(ks[0], (inp, hidden), jnp.float32) * 0.2
        p["bn1"] = bn(ks[3], hidden)
    return p


if __name__ == "__main__":
    key = jax.random.PRNGKey(0)
    kx, kp1, kp2, kp3 = jax.random.split(key, 4)

    tests = [
        # (N, inp, oup, H, W, stride, expand_ratio, param_key)
        (2, 4, 4, 16, 16, 1, 4, kp1),   # residual branch active
        (2, 4, 8, 16, 16, 2, 4, kp2),   # stride-2, no residual
        (2, 8, 8, 16, 16, 1, 1, kp3),   # expand_ratio == 1 branch (+ residual)
    ]
    for (N, inp, oup, H, W, stride, er, kp) in tests:
        x = jax.random.normal(kx, (N, inp, H, W), jnp.float32)
        params = make_params(kp, inp, oup, er)

        out = jax.block_until_ready(inverted_residual_pallas(x, params, stride))
        ref = inverted_residual_ref(x, params, stride)

        assert out.shape == ref.shape, (out.shape, ref.shape)
        # Kernel runs bf16 inputs / bf16 MXU weights with f32 accumulation; the
        # reference is f32 HIGHEST, so allow bf16-class error.
        max_err = float(jnp.max(jnp.abs(out - ref)))
        assert jnp.allclose(out, ref, atol=3e-2, rtol=2e-2), max_err

    print("KERNEL_OK")
</pallas_src>

<mosaic_0001>
module attributes {stable_mosaic.version = 11 : i64} {
  func.func @kernel(%arg0: i32, %arg1: memref<1x4x256xbf16, #tpu.memory_space<vmem>>, %arg2: memref<4x256xf32, #tpu.memory_space<vmem>>, %arg3: memref<16x4xbf16, #tpu.memory_space<vmem>>, %arg4: memref<16x1xf32, #tpu.memory_space<vmem>>, %arg5: memref<16x9xf32, #tpu.memory_space<vmem>>, %arg6: memref<16x1xf32, #tpu.memory_space<vmem>>, %arg7: memref<4x16xbf16, #tpu.memory_space<vmem>>, %arg8: memref<4x1xf32, #tpu.memory_space<vmem>>, %arg9: memref<1x4x256xf32, #tpu.memory_space<vmem>>) attributes {dimension_semantics = [#tpu.dimension_semantics<parallel>], iteration_bounds = array<i64: 2>, scalar_prefetch = 0 : i64, scratch_operands = 0 : i64, tpu.core_type = #tpu.core_type<tc>, window_params = [{transform_indices = @transform_0, window_bounds = array<i64: 1, 4, 256>}, {pipeline_mode = #tpu.pipeline_mode<synchronous>, transform_indices = @transform_1, window_bounds = array<i64: 4, 256>}, {pipeline_mode = #tpu.pipeline_mode<synchronous>, transform_indices = @transform_2, window_bounds = array<i64: 16, 4>}, {pipeline_mode = #tpu.pipeline_mode<synchronous>, transform_indices = @transform_3, window_bounds = array<i64: 16, 1>}, {pipeline_mode = #tpu.pipeline_mode<synchronous>, transform_indices = @transform_4, window_bounds = array<i64: 16, 9>}, {pipeline_mode = #tpu.pipeline_mode<synchronous>, transform_indices = @transform_5, window_bounds = array<i64: 16, 1>}, {pipeline_mode = #tpu.pipeline_mode<synchronous>, transform_indices = @transform_6, window_bounds = array<i64: 4, 16>}, {pipeline_mode = #tpu.pipeline_mode<synchronous>, transform_indices = @transform_7, window_bounds = array<i64: 4, 1>}, {transform_indices = @transform_8, window_bounds = array<i64: 1, 4, 256>}]} {
    %c0 = arith.constant 0 : index
    %c0_0 = arith.constant 0 : index
    %0 = vector.load %arg3[%c0, %c0_0] : memref<16x4xbf16, #tpu.memory_space<vmem>>, vector<16x4xbf16>
    %c0_1 = arith.constant 0 : index
    %c0_2 = arith.constant 0 : index
    %c0_3 = arith.constant 0 : index
    %1 = vector.load %arg1[%c0_1, %c0_2, %c0_3] : memref<1x4x256xbf16, #tpu.memory_space<vmem>>, vector<1x4x256xbf16>
    %2 = vector.shape_cast %1 : vector<1x4x256xbf16> to vector<4x256xbf16>
    %cst = arith.constant dense<0.000000e+00> : vector<16x256xf32>
    %3 = tpu.matmul %0, %2, %cst {dimension_numbers = #tpu.dot_dimension_numbers<[1], [0], [0], [1], [0, 0, 1, 1], [], []>} : vector<16x4xbf16>, vector<4x256xbf16>, vector<16x256xf32> -> vector<16x256xf32>
    %c0_4 = arith.constant 0 : index
    %c0_5 = arith.constant 0 : index
    %4 = vector.load %arg4[%c0_4, %c0_5] : memref<16x1xf32, #tpu.memory_space<vmem>>, vector<16x1xf32>
    %5 = vector.broadcast %4 : vector<16x1xf32> to vector<16x256xf32>
    %6 = arith.addf %3, %5 : vector<16x256xf32>
    %cst_6 = arith.constant 0.000000e+00 : f32
    %cst_7 = arith.constant 6.000000e+00 : f32
    %7 = vector.broadcast %cst_6 : f32 to vector<16x256xf32>
    %8 = arith.maximumf %7, %6 : vector<16x256xf32>
    %9 = vector.broadcast %cst_7 : f32 to vector<16x256xf32>
    %10 = arith.minimumf %9, %8 : vector<16x256xf32>
    %c0_8 = arith.constant 0 : index
    %c0_9 = arith.constant 0 : index
    %11 = vector.load %arg5[%c0_8, %c0_9] : memref<16x9xf32, #tpu.memory_space<vmem>>, vector<16x9xf32>
    %c0_10 = arith.constant 0 : index
    %c0_11 = arith.constant 0 : index
    %12 = vector.load %arg2[%c0_10, %c0_11] : memref<4x256xf32, #tpu.memory_space<vmem>>, vector<1x256xf32>
    %c1 = arith.constant 1 : index
    %c0_12 = arith.constant 0 : index
    %13 = vector.load %arg2[%c1, %c0_12] : memref<4x256xf32, #tpu.memory_space<vmem>>, vector<1x256xf32>
    %c2 = arith.constant 2 : index
    %c0_13 = arith.constant 0 : index
    %14 = vector.load %arg2[%c2, %c0_13] : memref<4x256xf32, #tpu.memory_space<vmem>>, vector<1x256xf32>
    %c3 = arith.constant 3 : index
    %c0_14 = arith.constant 0 : index
    %15 = vector.load %arg2[%c3, %c0_14] : memref<4x256xf32, #tpu.memory_space<vmem>>, vector<1x256xf32>
    %16 = vector.broadcast %12 : vector<1x256xf32> to vector<16x256xf32>
    %17 = arith.mulf %10, %16 : vector<16x256xf32>
    %18 = vector.broadcast %13 : vector<1x256xf32> to vector<16x256xf32>
    %19 = arith.mulf %10, %18 : vector<16x256xf32>
    %20 = vector.extract_strided_slice %11 {offsets = [0, 3], sizes = [16, 1], strides = [1, 1]} : vector<16x9xf32> to vector<16x1xf32>
    %c1_i32 = arith.constant 1 : i32
    %21 = tpu.dynamic_rotate %17 by %c1_i32 dim 1 : vector<16x256xf32>, i32 -> vector<16x256xf32>
    %22 = vector.broadcast %20 : vector<16x1xf32> to vector<16x256xf32>
    %23 = arith.mulf %22, %21 : vector<16x256xf32>
    %24 = vector.extract_strided_slice %11 {offsets = [0, 4], sizes = [16, 1], strides = [1, 1]} : vector<16x9xf32> to vector<16x1xf32>
    %25 = vector.broadcast %24 : vector<16x1xf32> to vector<16x256xf32>
    %26 = arith.mulf %25, %10 : vector<16x256xf32>
    %27 = arith.addf %23, %26 : vector<16x256xf32>
    %28 = vector.extract_strided_slice %11 {offsets = [0, 5], sizes = [16, 1], strides = [1, 1]} : vector<16x9xf32> to vector<16x1xf32>
    %c255_i32 = arith.constant 255 : i32
    %29 = tpu.dynamic_rotate %19 by %c255_i32 dim 1 : vector<16x256xf32>, i32 -> vector<16x256xf32>
    %30 = vector.broadcast %28 : vector<16x1xf32> to vector<16x256xf32>
    %31 = arith.mulf %30, %29 : vector<16x256xf32>
    %32 = arith.addf %27, %31 : vector<16x256xf32>
    %33 = vector.extract_strided_slice %11 {offsets = [0, 0], sizes = [16, 1], strides = [1, 1]} : vector<16x9xf32> to vector<16x1xf32>
    %c17_i32 = arith.constant 17 : i32
    %34 = tpu.dynamic_rotate %17 by %c17_i32 dim 1 : vector<16x256xf32>, i32 -> vector<16x256xf32>
    %35 = vector.broadcast %33 : vector<16x1xf32> to vector<16x256xf32>
    %36 = arith.mulf %35, %34 : vector<16x256xf32>
    %37 = vector.extract_strided_slice %11 {offsets = [0, 1], sizes = [16, 1], strides = [1, 1]} : vector<16x9xf32> to vector<16x1xf32>
    %c16_i32 = arith.constant 16 : i32
    %38 = tpu.dynamic_rotate %10 by %c16_i32 dim 1 : vector<16x256xf32>, i32 -> vector<16x256xf32>
    %39 = vector.broadcast %37 : vector<16x1xf32> to vector<16x256xf32>
    %40 = arith.mulf %39, %38 : vector<16x256xf32>
    %41 = arith.addf %36, %40 : vector<16x256xf32>
    %42 = vector.extract_strided_slice %11 {offsets = [0, 2], sizes = [16, 1], strides = [1, 1]} : vector<16x9xf32> to vector<16x1xf32>
    %c15_i32 = arith.constant 15 : i32
    %43 = tpu.dynamic_rotate %19 by %c15_i32 dim 1 : vector<16x256xf32>, i32 -> vector<16x256xf32>
    %44 = vector.broadcast %42 : vector<16x1xf32> to vector<16x256xf32>
    %45 = arith.mulf %44, %43 : vector<16x256xf32>
    %46 = arith.addf %41, %45 : vector<16x256xf32>
    %47 = vector.broadcast %14 : vector<1x256xf32> to vector<16x256xf32>
    %48 = arith.mulf %47, %46 : vector<16x256xf32>
    %49 = arith.addf %32, %48 : vector<16x256xf32>
    %50 = vector.extract_strided_slice %11 {offsets = [0, 6], sizes = [16, 1], strides = [1, 1]} : vector<16x9xf32> to vector<16x1xf32>
    %c241_i32 = arith.constant 241 : i32
    %51 = tpu.dynamic_rotate %17 by %c241_i32 dim 1 : vector<16x256xf32>, i32 -> vector<16x256xf32>
    %52 = vector.broadcast %50 : vector<16x1xf32> to vector<16x256xf32>
    %53 = arith.mulf %52, %51 : vector<16x256xf32>
    %54 = vector.extract_strided_slice %11 {offsets = [0, 7], sizes = [16, 1], strides = [1, 1]} : vector<16x9xf32> to vector<16x1xf32>
    %c240_i32 = arith.constant 240 : i32
    %55 = tpu.dynamic_rotate %10 by %c240_i32 dim 1 : vector<16x256xf32>, i32 -> vector<16x256xf32>
    %56 = vector.broadcast %54 : vector<16x1xf32> to vector<16x256xf32>
    %57 = arith.mulf %56, %55 : vector<16x256xf32>
    %58 = arith.addf %53, %57 : vector<16x256xf32>
    %59 = vector.extract_strided_slice %11 {offsets = [0, 8], sizes = [16, 1], strides = [1, 1]} : vector<16x9xf32> to vector<16x1xf32>
    %c239_i32 = arith.constant 239 : i32
    %60 = tpu.dynamic_rotate %19 by %c239_i32 dim 1 : vector<16x256xf32>, i32 -> vector<16x256xf32>
    %61 = vector.broadcast %59 : vector<16x1xf32> to vector<16x256xf32>
    %62 = arith.mulf %61, %60 : vector<16x256xf32>
    %63 = arith.addf %58, %62 : vector<16x256xf32>
    %64 = vector.broadcast %15 : vector<1x256xf32> to vector<16x256xf32>
    %65 = arith.mulf %64, %63 : vector<16x256xf32>
    %66 = arith.addf %49, %65 : vector<16x256xf32>
    %c0_15 = arith.constant 0 : index
    %c0_16 = arith.constant 0 : index
    %67 = vector.load %arg6[%c0_15, %c0_16] : memref<16x1xf32, #tpu.memory_space<vmem>>, vector<16x1xf32>
    %68 = vector.broadcast %67 : vector<16x1xf32> to vector<16x256xf32>
    %69 = arith.addf %66, %68 : vector<16x256xf32>
    %cst_17 = arith.constant 0.000000e+00 : f32
    %cst_18 = arith.constant 6.000000e+00 : f32
    %70 = vector.broadcast %cst_17 : f32 to vector<16x256xf32>
    %71 = arith.maximumf %70, %69 : vector<16x256xf32>
    %72 = vector.broadcast %cst_18 : f32 to vector<16x256xf32>
    %73 = arith.minimumf %72, %71 : vector<16x256xf32>
    %c0_19 = arith.constant 0 : index
    %c0_20 = arith.constant 0 : index
    %74 = vector.load %arg7[%c0_19, %c0_20] : memref<4x16xbf16, #tpu.memory_space<vmem>>, vector<4x16xbf16>
    %75 = arith.truncf %73 : vector<16x256xf32> to vector<16x256xbf16>
    %cst_21 = arith.constant dense<0.000000e+00> : vector<4x256xf32>
    %76 = tpu.matmul %74, %75, %cst_21 {dimension_numbers = #tpu.dot_dimension_numbers<[1], [0], [0], [1], [0, 0, 1, 1], [], []>} : vector<4x16xbf16>, vector<16x256xbf16>, vector<4x256xf32> -> vector<4x256xf32>
    %c0_22 = arith.constant 0 : index
    %c0_23 = arith.constant 0 : index
    %77 = vector.load %arg8[%c0_22, %c0_23] : memref<4x1xf32, #tpu.memory_space<vmem>>, vector<4x1xf32>
    %78 = vector.broadcast %77 : vector<4x1xf32> to vector<4x256xf32>
    %79 = arith.addf %76, %78 : vector<4x256xf32>
    %c0_24 = arith.constant 0 : index
    %c0_25 = arith.constant 0 : index
    %c0_26 = arith.constant 0 : index
    %80 = vector.load %arg1[%c0_24, %c0_25, %c0_26] : memref<1x4x256xbf16, #tpu.memory_space<vmem>>, vector<1x4x256xbf16>
    %81 = vector.shape_cast %80 : vector<1x4x256xbf16> to vector<4x256xbf16>
    %82 = arith.extf %81 : vector<4x256xbf16> to vector<4x256xf32>
    %83 = arith.addf %79, %82 : vector<4x256xf32>
    %c0_27 = arith.constant 0 : index
    %c0_28 = arith.constant 0 : index
    %c0_29 = arith.constant 0 : index
    %84 = vector.load %arg9[%c0_27, %c0_28, %c0_29] : memref<1x4x256xf32, #tpu.memory_space<vmem>>, vector<1x4x256xf32>
    %85 = vector.shape_cast %84 : vector<1x4x256xf32> to vector<4x256xf32>
    %86 = vector.shape_cast %83 : vector<4x256xf32> to vector<1x4x256xf32>
    tpu.vector_store %arg9[%c0_27, %c0_28, %c0_29], %86 {strides = array<i32>} : memref<1x4x256xf32, #tpu.memory_space<vmem>>, vector<1x4x256xf32>,
    return
  }
  func.func @transform_0(%arg0: i32) -> (i32, i32, i32) {
    %c0_i32 = arith.constant 0 : i32
    %c0_i32_0 = arith.constant 0 : i32
    %c0_i32_1 = arith.constant 0 : i32
    return %arg0, %c0_i32, %c0_i32_0 : i32, i32, i32
  }
  func.func @transform_1(%arg0: i32) -> (i32, i32) {
    %c0_i32 = arith.constant 0 : i32
    %c0_i32_0 = arith.constant 0 : i32
    %c0_i32_1 = arith.constant 0 : i32
    return %c0_i32, %c0_i32_0 : i32, i32
  }
  func.func @transform_2(%arg0: i32) -> (i32, i32) {
    %c0_i32 = arith.constant 0 : i32
    %c0_i32_0 = arith.constant 0 : i32
    %c0_i32_1 = arith.constant 0 : i32
    return %c0_i32, %c0_i32_0 : i32, i32
  }
  func.func @transform_3(%arg0: i32) -> (i32, i32) {
    %c0_i32 = arith.constant 0 : i32
    %c0_i32_0 = arith.constant 0 : i32
    %c0_i32_1 = arith.constant 0 : i32
    return %c0_i32, %c0_i32_0 : i32, i32
  }
  func.func @transform_4(%arg0: i32) -> (i32, i32) {
    %c0_i32 = arith.constant 0 : i32
    %c0_i32_0 = arith.constant 0 : i32
    %c0_i32_1 = arith.constant 0 : i32
    return %c0_i32, %c0_i32_0 : i32, i32
  }
  func.func @transform_5(%arg0: i32) -> (i32, i32) {
    %c0_i32 = arith.constant 0 : i32
    %c0_i32_0 = arith.constant 0 : i32
    %c0_i32_1 = arith.constant 0 : i32
    return %c0_i32, %c0_i32_0 : i32, i32
  }
  func.func @transform_6(%arg0: i32) -> (i32, i32) {
    %c0_i32 = arith.constant 0 : i32
    %c0_i32_0 = arith.constant 0 : i32
    %c0_i32_1 = arith.constant 0 : i32
    return %c0_i32, %c0_i32_0 : i32, i32
  }
  func.func @transform_7(%arg0: i32) -> (i32, i32) {
    %c0_i32 = arith.constant 0 : i32
    %c0_i32_0 = arith.constant 0 : i32
    %c0_i32_1 = arith.constant 0 : i32
    return %c0_i32, %c0_i32_0 : i32, i32
  }
  func.func @transform_8(%arg0: i32) -> (i32, i32, i32) {
    %c0_i32 = arith.constant 0 : i32
    %c0_i32_0 = arith.constant 0 : i32
    %c0_i32_1 = arith.constant 0 : i32
    return %arg0, %c0_i32, %c0_i32_0 : i32, i32, i32
  }
}

module attributes {stable_mosaic.version = 11 : i64} {
  func.func @kernel(%arg0: i32, %arg1: memref<1x4x256xbf16, #tpu.memory_space<vmem>>, %arg2: memref<4x256xf32, #tpu.memory_space<vmem>>, %arg3: memref<16x4xbf16, #tpu.memory_space<vmem>>, %arg4: memref<16x1xf32, #tpu.memory_space<vmem>>, %arg5: memref<16x9xf32, #tpu.memory_space<vmem>>, %arg6: memref<16x1xf32, #tpu.memory_space<vmem>>, %arg7: memref<4x16xbf16, #tpu.memory_space<vmem>>, %arg8: memref<4x1xf32, #tpu.memory_space<vmem>>, %arg9: memref<1x4x256xf32, #tpu.memory_space<vmem>>) attributes {dimension_semantics = [#tpu.dimension_semantics<parallel>], iteration_bounds = array<i64: 2>, scalar_prefetch = 0 : i64, scratch_operands = 0 : i64, tpu.core_type = #tpu.core_type<tc>, window_params = [{transform_indices = @transform_0, window_bounds = array<i64: 1, 4, 256>}, {pipeline_mode = #tpu.pipeline_mode<synchronous>, transform_indices = @transform_1, window_bounds = array<i64: 4, 256>}, {pipeline_mode = #tpu.pipeline_mode<synchronous>, transform_indices = @transform_2, window_bounds = array<i64: 16, 4>}, {pipeline_mode = #tpu.pipeline_mode<synchronous>, transform_indices = @transform_3, window_bounds = array<i64: 16, 1>}, {pipeline_mode = #tpu.pipeline_mode<synchronous>, transform_indices = @transform_4, window_bounds = array<i64: 16, 9>}, {pipeline_mode = #tpu.pipeline_mode<synchronous>, transform_indices = @transform_5, window_bounds = array<i64: 16, 1>}, {pipeline_mode = #tpu.pipeline_mode<synchronous>, transform_indices = @transform_6, window_bounds = array<i64: 4, 16>}, {pipeline_mode = #tpu.pipeline_mode<synchronous>, transform_indices = @transform_7, window_bounds = array<i64: 4, 1>}, {transform_indices = @transform_8, window_bounds = array<i64: 1, 4, 256>}]} {
    %c0 = arith.constant 0 : index
    %c0_0 = arith.constant 0 : index
    %0 = vector.load %arg3[%c0, %c0_0] : memref<16x4xbf16, #tpu.memory_space<vmem>>, vector<16x4xbf16>
    %c0_1 = arith.constant 0 : index
    %c0_2 = arith.constant 0 : index
    %c0_3 = arith.constant 0 : index
    %1 = vector.load %arg1[%c0_1, %c0_2, %c0_3] : memref<1x4x256xbf16, #tpu.memory_space<vmem>>, vector<1x4x256xbf16>
    %2 = vector.shape_cast %1 : vector<1x4x256xbf16> to vector<4x256xbf16>
    %cst = arith.constant dense<0.000000e+00> : vector<16x256xf32>
    %3 = tpu.matmul %0, %2, %cst {dimension_numbers = #tpu.dot_dimension_numbers<[1], [0], [0], [1], [0, 0, 1, 1], [], []>} : vector<16x4xbf16>, vector<4x256xbf16>, vector<16x256xf32> -> vector<16x256xf32>
    %c0_4 = arith.constant 0 : index
    %c0_5 = arith.constant 0 : index
    %4 = vector.load %arg4[%c0_4, %c0_5] : memref<16x1xf32, #tpu.memory_space<vmem>>, vector<16x1xf32>
    %5 = vector.broadcast %4 : vector<16x1xf32> to vector<16x256xf32>
    %6 = arith.addf %3, %5 : vector<16x256xf32>
    %cst_6 = arith.constant 0.000000e+00 : f32
    %cst_7 = arith.constant 6.000000e+00 : f32
    %7 = vector.broadcast %cst_6 : f32 to vector<16x256xf32>
    %8 = arith.maximumf %7, %6 : vector<16x256xf32>
    %9 = vector.broadcast %cst_7 : f32 to vector<16x256xf32>
    %10 = arith.minimumf %9, %8 : vector<16x256xf32>
    %c0_8 = arith.constant 0 : index
    %c0_9 = arith.constant 0 : index
    %11 = vector.load %arg5[%c0_8, %c0_9] : memref<16x9xf32, #tpu.memory_space<vmem>>, vector<16x9xf32>
    %c0_10 = arith.constant 0 : index
    %c0_11 = arith.constant 0 : index
    %12 = vector.load %arg2[%c0_10, %c0_11] : memref<4x256xf32, #tpu.memory_space<vmem>>, vector<1x256xf32>
    %c1 = arith.constant 1 : index
    %c0_12 = arith.constant 0 : index
    %13 = vector.load %arg2[%c1, %c0_12] : memref<4x256xf32, #tpu.memory_space<vmem>>, vector<1x256xf32>
    %c2 = arith.constant 2 : index
    %c0_13 = arith.constant 0 : index
    %14 = vector.load %arg2[%c2, %c0_13] : memref<4x256xf32, #tpu.memory_space<vmem>>, vector<1x256xf32>
    %c3 = arith.constant 3 : index
    %c0_14 = arith.constant 0 : index
    %15 = vector.load %arg2[%c3, %c0_14] : memref<4x256xf32, #tpu.memory_space<vmem>>, vector<1x256xf32>
    %16 = vector.broadcast %12 : vector<1x256xf32> to vector<16x256xf32>
    %17 = arith.mulf %10, %16 : vector<16x256xf32>
    %18 = vector.broadcast %13 : vector<1x256xf32> to vector<16x256xf32>
    %19 = arith.mulf %10, %18 : vector<16x256xf32>
    %20 = vector.extract_strided_slice %11 {offsets = [0, 3], sizes = [16, 1], strides = [1, 1]} : vector<16x9xf32> to vector<16x1xf32>
    %c1_i32 = arith.constant 1 : i32
    %21 = tpu.dynamic_rotate %17 by %c1_i32 dim 1 : vector<16x256xf32>, i32 -> vector<16x256xf32>
    %22 = vector.broadcast %20 : vector<16x1xf32> to vector<16x256xf32>
    %23 = arith.mulf %22, %21 : vector<16x256xf32>
    %24 = vector.extract_strided_slice %11 {offsets = [0, 4], sizes = [16, 1], strides = [1, 1]} : vector<16x9xf32> to vector<16x1xf32>
    %25 = vector.broadcast %24 : vector<16x1xf32> to vector<16x256xf32>
    %26 = arith.mulf %25, %10 : vector<16x256xf32>
    %27 = arith.addf %23, %26 : vector<16x256xf32>
    %28 = vector.extract_strided_slice %11 {offsets = [0, 5], sizes = [16, 1], strides = [1, 1]} : vector<16x9xf32> to vector<16x1xf32>
    %c255_i32 = arith.constant 255 : i32
    %29 = tpu.dynamic_rotate %19 by %c255_i32 dim 1 : vector<16x256xf32>, i32 -> vector<16x256xf32>
    %30 = vector.broadcast %28 : vector<16x1xf32> to vector<16x256xf32>
    %31 = arith.mulf %30, %29 : vector<16x256xf32>
    %32 = arith.addf %27, %31 : vector<16x256xf32>
    %33 = vector.extract_strided_slice %11 {offsets = [0, 0], sizes = [16, 1], strides = [1, 1]} : vector<16x9xf32> to vector<16x1xf32>
    %c17_i32 = arith.constant 17 : i32
    %34 = tpu.dynamic_rotate %17 by %c17_i32 dim 1 : vector<16x256xf32>, i32 -> vector<16x256xf32>
    %35 = vector.broadcast %33 : vector<16x1xf32> to vector<16x256xf32>
    %36 = arith.mulf %35, %34 : vector<16x256xf32>
    %37 = vector.extract_strided_slice %11 {offsets = [0, 1], sizes = [16, 1], strides = [1, 1]} : vector<16x9xf32> to vector<16x1xf32>
    %c16_i32 = arith.constant 16 : i32
    %38 = tpu.dynamic_rotate %10 by %c16_i32 dim 1 : vector<16x256xf32>, i32 -> vector<16x256xf32>
    %39 = vector.broadcast %37 : vector<16x1xf32> to vector<16x256xf32>
    %40 = arith.mulf %39, %38 : vector<16x256xf32>
    %41 = arith.addf %36, %40 : vector<16x256xf32>
    %42 = vector.extract_strided_slice %11 {offsets = [0, 2], sizes = [16, 1], strides = [1, 1]} : vector<16x9xf32> to vector<16x1xf32>
    %c15_i32 = arith.constant 15 : i32
    %43 = tpu.dynamic_rotate %19 by %c15_i32 dim 1 : vector<16x256xf32>, i32 -> vector<16x256xf32>
    %44 = vector.broadcast %42 : vector<16x1xf32> to vector<16x256xf32>
    %45 = arith.mulf %44, %43 : vector<16x256xf32>
    %46 = arith.addf %41, %45 : vector<16x256xf32>
    %47 = vector.broadcast %14 : vector<1x256xf32> to vector<16x256xf32>
    %48 = arith.mulf %47, %46 : vector<16x256xf32>
    %49 = arith.addf %32, %48 : vector<16x256xf32>
    %50 = vector.extract_strided_slice %11 {offsets = [0, 6], sizes = [16, 1], strides = [1, 1]} : vector<16x9xf32> to vector<16x1xf32>
    %c241_i32 = arith.constant 241 : i32
    %51 = tpu.dynamic_rotate %17 by %c241_i32 dim 1 : vector<16x256xf32>, i32 -> vector<16x256xf32>
    %52 = vector.broadcast %50 : vector<16x1xf32> to vector<16x256xf32>
    %53 = arith.mulf %52, %51 : vector<16x256xf32>
    %54 = vector.extract_strided_slice %11 {offsets = [0, 7], sizes = [16, 1], strides = [1, 1]} : vector<16x9xf32> to vector<16x1xf32>
    %c240_i32 = arith.constant 240 : i32
    %55 = tpu.dynamic_rotate %10 by %c240_i32 dim 1 : vector<16x256xf32>, i32 -> vector<16x256xf32>
    %56 = vector.broadcast %54 : vector<16x1xf32> to vector<16x256xf32>
    %57 = arith.mulf %56, %55 : vector<16x256xf32>
    %58 = arith.addf %53, %57 : vector<16x256xf32>
    %59 = vector.extract_strided_slice %11 {offsets = [0, 8], sizes = [16, 1], strides = [1, 1]} : vector<16x9xf32> to vector<16x1xf32>
    %c239_i32 = arith.constant 239 : i32
    %60 = tpu.dynamic_rotate %19 by %c239_i32 dim 1 : vector<16x256xf32>, i32 -> vector<16x256xf32>
    %61 = vector.broadcast %59 : vector<16x1xf32> to vector<16x256xf32>
    %62 = arith.mulf %61, %60 : vector<16x256xf32>
    %63 = arith.addf %58, %62 : vector<16x256xf32>
    %64 = vector.broadcast %15 : vector<1x256xf32> to vector<16x256xf32>
    %65 = arith.mulf %64, %63 : vector<16x256xf32>
    %66 = arith.addf %49, %65 : vector<16x256xf32>
    %c0_15 = arith.constant 0 : index
    %c0_16 = arith.constant 0 : index
    %67 = vector.load %arg6[%c0_15, %c0_16] : memref<16x1xf32, #tpu.memory_space<vmem>>, vector<16x1xf32>
    %68 = vector.broadcast %67 : vector<16x1xf32> to vector<16x256xf32>
    %69 = arith.addf %66, %68 : vector<16x256xf32>
    %cst_17 = arith.constant 0.000000e+00 : f32
    %cst_18 = arith.constant 6.000000e+00 : f32
    %70 = vector.broadcast %cst_17 : f32 to vector<16x256xf32>
    %71 = arith.maximumf %70, %69 : vector<16x256xf32>
    %72 = vector.broadcast %cst_18 : f32 to vector<16x256xf32>
    %73 = arith.minimumf %72, %71 : vector<16x256xf32>
    %c0_19 = arith.constant 0 : index
    %c0_20 = arith.constant 0 : index
    %74 = vector.load %arg7[%c0_19, %c0_20] : memref<4x16xbf16, #tpu.memory_space<vmem>>, vector<4x16xbf16>
    %75 = arith.truncf %73 : vector<16x256xf32> to vector<16x256xbf16>
    %cst_21 = arith.constant dense<0.000000e+00> : vector<4x256xf32>
    %76 = tpu.matmul %74, %75, %cst_21 {dimension_numbers = #tpu.dot_dimension_numbers<[1], [0], [0], [1], [0, 0, 1, 1], [], []>} : vector<4x16xbf16>, vector<16x256xbf16>, vector<4x256xf32> -> vector<4x256xf32>
    %c0_22 = arith.constant 0 : index
    %c0_23 = arith.constant 0 : index
    %77 = vector.load %arg8[%c0_22, %c0_23] : memref<4x1xf32, #tpu.memory_space<vmem>>, vector<4x1xf32>
    %78 = vector.broadcast %77 : vector<4x1xf32> to vector<4x256xf32>
    %79 = arith.addf %76, %78 : vector<4x256xf32>
    %c0_24 = arith.constant 0 : index
    %c0_25 = arith.constant 0 : index
    %c0_26 = arith.constant 0 : index
    %80 = vector.load %arg1[%c0_24, %c0_25, %c0_26] : memref<1x4x256xbf16, #tpu.memory_space<vmem>>, vector<1x4x256xbf16>
    %81 = vector.shape_cast %80 : vector<1x4x256xbf16> to vector<4x256xbf16>
    %82 = arith.extf %81 : vector<4x256xbf16> to vector<4x256xf32>
    %83 = arith.addf %79, %82 : vector<4x256xf32>
    %c0_27 = arith.constant 0 : index
    %c0_28 = arith.constant 0 : index
    %c0_29 = arith.constant 0 : index
    %84 = vector.load %arg9[%c0_27, %c0_28, %c0_29] : memref<1x4x256xf32, #tpu.memory_space<vmem>>, vector<1x4x256xf32>
    %85 = vector.shape_cast %84 : vector<1x4x256xf32> to vector<4x256xf32>
    %86 = vector.shape_cast %83 : vector<4x256xf32> to vector<1x4x256xf32>
    tpu.vector_store %arg9[%c0_27, %c0_28, %c0_29], %86 {strides = array<i32>} : memref<1x4x256xf32, #tpu.memory_space<vmem>>, vector<1x4x256xf32>,
    return
  }
  func.func @transform_0(%arg0: i32) -> (i32, i32, i32) {
    %c0_i32 = arith.constant 0 : i32
    %c0_i32_0 = arith.constant 0 : i32
    %c0_i32_1 = arith.constant 0 : i32
    return %arg0, %c0_i32, %c0_i32_0 : i32, i32, i32
  }
  func.func @transform_1(%arg0: i32) -> (i32, i32) {
    %c0_i32 = arith.constant 0 : i32
    %c0_i32_0 = arith.constant 0 : i32
    %c0_i32_1 = arith.constant 0 : i32
    return %c0_i32, %c0_i32_0 : i32, i32
  }
  func.func @transform_2(%arg0: i32) -> (i32, i32) {
    %c0_i32 = arith.constant 0 : i32
    %c0_i32_0 = arith.constant 0 : i32
    %c0_i32_1 = arith.constant 0 : i32
    return %c0_i32, %c0_i32_0 : i32, i32
  }
  func.func @transform_3(%arg0: i32) -> (i32, i32) {
    %c0_i32 = arith.constant 0 : i32
    %c0_i32_0 = arith.constant 0 : i32
    %c0_i32_1 = arith.constant 0 : i32
    return %c0_i32, %c0_i32_0 : i32, i32
  }
  func.func @transform_4(%arg0: i32) -> (i32, i32) {
    %c0_i32 = arith.constant 0 : i32
    %c0_i32_0 = arith.constant 0 : i32
    %c0_i32_1 = arith.constant 0 : i32
    return %c0_i32, %c0_i32_0 : i32, i32
  }
  func.func @transform_5(%arg0: i32) -> (i32, i32) {
    %c0_i32 = arith.constant 0 : i32
    %c0_i32_0 = arith.constant 0 : i32
    %c0_i32_1 = arith.constant 0 : i32
    return %c0_i32, %c0_i32_0 : i32, i32
  }
  func.func @transform_6(%arg0: i32) -> (i32, i32) {
    %c0_i32 = arith.constant 0 : i32
    %c0_i32_0 = arith.constant 0 : i32
    %c0_i32_1 = arith.constant 0 : i32
    return %c0_i32, %c0_i32_0 : i32, i32
  }
  func.func @transform_7(%arg0: i32) -> (i32, i32) {
    %c0_i32 = arith.constant 0 : i32
    %c0_i32_0 = arith.constant 0 : i32
    %c0_i32_1 = arith.constant 0 : i32
    return %c0_i32, %c0_i32_0 : i32, i32
  }
  func.func @transform_8(%arg0: i32) -> (i32, i32, i32) {
    %c0_i32 = arith.constant 0 : i32
    %c0_i32_0 = arith.constant 0 : i32
    %c0_i32_1 = arith.constant 0 : i32
    return %arg0, %c0_i32, %c0_i32_0 : i32, i32, i32
  }
}

</mosaic_0001>

<bundles_post_ra>
// kernel: tpu_custom_call.1
= control target key start
LH: loop header
LB: loop body
LE: loop exit
PB: predicated region body
PF: predicated region fallthrough
CT: control target
= control target key end

     0   :  { %13 = vsyncpa [#allocation3], 0  ;;  %s1505_s0 = inlined_call_operand.vmem [shape: bf16[2,4,256], index: 0, kind: input, shape index: {}]   ;;  %s1506_s1 = inlined_call_operand.vmem [shape: f32[4,256], index: 1, kind: input, shape index: {}]   ;;  %s1507_s2 = inlined_call_operand.vmem [shape: bf16[16,4], index: 2, kind: input, shape index: {}]   ;;  %s1508_s3 = inlined_call_operand.vmem [shape: f32[16,1], index: 3, kind: input, shape index: {}]   ;;  %s1509_s4 = inlined_call_operand.vmem [shape: f32[16,9], index: 4, kind: input, shape index: {}]   ;;  %s1510_s5 = inlined_call_operand.vmem [shape: f32[16,1], index: 5, kind: input, shape index: {}]   ;;  %s1511_s6 = inlined_call_operand.vmem [shape: bf16[4,16], index: 6, kind: input, shape index: {}]   ;;  %s1512_s7 = inlined_call_operand.vmem [shape: f32[4,1], index: 7, kind: input, shape index: {}]   ;;  %s1513_s8 = inlined_call_operand.hbm [shape: f32[2,4,256], index: 8, kind: output, shape index: {}]  }
   0x1   :  { %15 = vsyncpa [#allocation3 + $0x1], 0  ;;  %s1099_s27 = smov 0   ;;  %s1101_s28 = smov 0  }
   0x2   :  { %s1103_s29 = smov 0   ;;  %s1105_s30 = smov 0  }
   0x3 LB: > { %s1120_s9 = sadd.s32 4294967295, %s1033_s30   ;;  %s876_s10 = sadd.s32 4294967294, %s1033_s30   ;;  %s1033_s30 = sphi %s1105_s30, %s1519_s30   ;;  %s1029_s29 = sphi %s1103_s29, %s1518_s29   ;;  %s1025_s28 = sphi %s1101_s28, %s1517_s28   ;;  %s1021_s27 = sphi %s1099_s27, %s1516_s27  }
   0x4   : > { %s1124_s11 = sadd.s32 1, %s1033_s30   ;;  %s201_s12 = sadd.s32 1, %s1029_s29 }
   0x5   : > { %s198_s13 = ssub.s32 %s1033_s30, %s1124_s11  ;;  %p211_p0 = scmp.ne.s32.totalorder %s1029_s29, %s1025_s28 }
   0x6   : > { %p199_p1 = scmp.eq.s32.totalorder %s198_s13, 0  ;;  %p212_p2 = scmp.eq.s32.totalorder %s1120_s9, 1 }
   0x7   : > { %p217_p3 = scmp.ne.s32.totalorder %s1025_s28, %s1021_s27  ;;  %p218_p4 = scmp.eq.s32.totalorder %s876_s10, 1 }
   0x8   : > { %s1135_s14 = scalar_select %p199_p1, %s1029_s29, %s201_s12  }
   0x9   : > { %p1137_p5 = por %p212_p2, %p211_p0  ;;  %p1141_p6 = por %p218_p4, %p217_p3 }
   0xa   : > { %p879_p7 = scmp.ge.s32.totalorder %s1033_s30, 1  ;;  %p265_p8 = scmp.lt.s32.totalorder %s1033_s30, 3 }
   0xc   : > { %p266_p9 = pnand %p879_p7, %p265_p8 }
   0xd   : > { %p299_p10 = scmp.lt.s32.totalorder (!%p266_p9), %s1120_s9, 1  ;;  %s1045_s23 = smov (!%p266_p9), 112  }
   0xe   : > { %269 = sbr.rel (%p266_p9) target bundleno = 651 (0x28b), region = 52  ;;  %s1047_s25 = smov (!%p266_p9), 15  }
   0xf   : > { %s1048_s26 = smov (!%p266_p9), 17   ;;  %s1049_s10 = smov (!%p266_p9), 113  }
  0x10   : > { %s1050_s12 = smov (!%p266_p9), 1   ;;  %s1052_s17 = smov (!%p266_p9), 111  }
  0x13   : > { %v329_v0 = vlaneseq  ;;  %v1035_v1 = vmov 1983009808   ;;  %v1036_v3 = vmov 0   ;;  %v1153_v4 = vld [vmem:[%s1509_s4] sm:$0xff]  ;;  %s300_s19 = scalar_select %p299_p10, %s1120_s9, 1  ;;  %v397_v8 = vld [vmem:[%s1509_s4 + $0x8] sm:$0xff] }
  0x14   : > { %v327_v2 = vunpack.c.l.s4 %v1035_v1  ;;  %377 = vmatprep.mubr.bf16.mxu0 %v1036_v3  ;;  %955 = vset.pattern.permute.xlu1 %v1036_v3  ;;  %v308_v6 = vld [vmem:[%s1508_s3] sm:$0xff]  ;;  %v309_v9 = vld [vmem:[%s1508_s3 + $0x8] sm:$0xff]  ;;  %vm338_vm0 = vcmask 1041408   ;;  %v1037_v15 = vmov 1   ;;  %vm334_vm1 = vcmask 31744  }
  0x15   : > { %v1157_v5 = vshrl.u32 %v329_v0, 7  ;;  %523 = vperm.xlu1 %955, %v1153_v4   ;;  %954 = vset.pattern.permute.xlu0 %v1036_v3  ;;  %s895_s24 = sshll.u32 %s300_s19, 2  ;;  %v972_v16 = vld [vmem:[%s1507_s2] sm:$0xff]   ;;  %v1038_v17 = vmov 3   ;;  %v1039_v18 = vmov 4   ;;  %v1040_v19 = vmov 2  }
  0x16   : > { %v328_v7 = vunpack.c.0.s8 %v327_v2  ;;  %312 = vperm.xlu0 %954, %v308_v6   ;;  %782 = vmatprep.mubr.bf16.mxu1 %v1036_v3  ;;  %s303_s13 = scalar_lea.vmem %s1505_s0, %s895_s24  ;;  %v1041_v20 = vmov 6   ;;  %v1042_v21 = vmov 5   ;;  %v1043_v22 = vmov 8   ;;  %v886_v34 = vld [vmem:[%s1506_s1 + $0x1] ss:$4 sm:$0x3] }
  0x17   : > { %v1175_v11 = vld [vmem:[%s303_s13] sm:$0xf]  ;;  %v1044_v23 = vmov 7   ;;  %v1200_v31 = vsub.s32 0, %v1157_v5  ;;  %s1046_s24 = smov 16   ;;  %v1229_v57 = vsub.s32 1, %v1157_v5 }
  0x18   : > { %v331_v10 = vsub.s32 %v328_v7, %v1157_v5  ;;  %v398_v35 = vld [vmem:[%s1506_s1] ss:$4 sm:$0x3]  ;;  %s1051_s13 = smov 127   ;;  %vm746_vm10 = vcmask 130048   ;;  %s896_s19 = sshll.u32 %s1120_s9, 7 }
  0x19   : > { %527 = vperm.xlu1 %955, %v397_v8   ;;  %v424_v42 = vrot.slane %v886_v34, %v1200_v31  ;;  %v409_v43 = vrot.slane %v398_v35, %v1200_v31  ;;  %v413_v58 = vrot.slane %v398_v35, %v1229_v57  ;;  %v428_v62 = vrot.slane %v886_v34, %v1229_v57  ;;  %v740_v5 = vld [vmem:[%s1512_s7] sm:$0xf] }
  0x1a   : > { %v332_v12 = vrot.slane %v1175_v11, %v331_v10  ;;  %317 = vperm.xlu0 %954, %v309_v9  }
  0x1c   : > { %v333_v13 = vcombine.high %v332_v12, %v332_v12  ;;  %v340_v14 = vsel %vm338_vm0, %v332_v12, 0 }
  0x1d   : > { %957 = vset.pattern.permute.xlu1 %v1037_v15 }
  0x1e   : > { %884 = vmatprep.subr.msk.bf16.mxu0 %vm338_vm0, %v333_v13  ;;  %552 = vperm.xlu1 %957, %v397_v8  }
  0x1f   : > { %360 = vmatpush1.bf16.msra.mxu0 %v340_v14  ;;  %956 = vset.pattern.permute.xlu0 %v1037_v15 }
  0x20   : > { %548 = vperm.xlu0 %956, %v1153_v4  }
  0x22   : > { %885 = vmatmul.mubr.msk.bf16.vlgmr.msra.gmra.mxu0 %vm334_vm1, %v972_v16  ;;  %958 = vset.pattern.permute.xlu1 %v1038_v17 }
  0x23   : > { %452 = vperm.xlu1 %958, %v1153_v4  }
  0x24   : > { %959 = vset.pattern.permute.xlu0 %v1038_v17 }
  0x25   : > { %457 = vperm.xlu0 %959, %v397_v8  }
  0x27   : > { %960 = vset.pattern.permute.xlu1 %v1039_v18 }
  0x28   : > { %465 = vperm.xlu1 %960, %v1153_v4  }
  0x29   : > { %961 = vset.pattern.permute.xlu0 %v1040_v19 }
  0x2a   : > { %577 = vperm.xlu0 %961, %v1153_v4  }
  0x2c   : > { %469 = vperm.xlu1 %960, %v397_v8  }
  0x2e   : > { %964 = vset.pattern.permute.xlu0 %v1041_v20 }
  0x2f   : > { %629 = vperm.xlu0 %964, %v397_v8  }
  0x30   : > { %962 = vset.pattern.permute.xlu1 %v1040_v19 }
  0x31   : > { %581 = vperm.xlu1 %962, %v397_v8  }
  0x33   : > { %966 = vset.pattern.permute.xlu0 %v1042_v21 }
  0x34   : > { %494 = vperm.xlu0 %966, %v1153_v4  }
  0x35   : > { %963 = vset.pattern.permute.xlu1 %v1041_v20 }
  0x36   : > { %625 = vperm.xlu1 %963, %v1153_v4  }
  0x38   : > { %969 = vset.pattern.permute.xlu0 %v1043_v22 }
  0x39   : > { %683 = vperm.xlu0 %969, %v397_v8  }
  0x3a   : > { %965 = vset.pattern.permute.xlu1 %v1044_v23 }
  0x3b   : > { %650 = vperm.xlu1 %965, %v1153_v4  }
  0x3d   : > { %970 = vset.pattern.permute.xlu0 %v1036_v3 }
  0x3f   : > { %654 = vperm.xlu1 %965, %v397_v8  }
  0x43   : > { %967 = vset.pattern.permute.xlu1 %v1042_v21 }
  0x44   : > { %498 = vperm.xlu1 %967, %v397_v8  }
  0x48   : > { %968 = vset.pattern.permute.xlu1 %v1043_v22 }
  0x49   : > { %679 = vperm.xlu1 %968, %v1153_v4   ;;  %v714_v4 = vld [vmem:[%s1510_s5 + $0x8] sm:$0xff] }
  0x4d   : > { %971 = vset.pattern.permute.xlu1 %v1036_v3  ;;  %v713_v3 = vld [vmem:[%s1510_s5] sm:$0xff] }
  0x90   : > { %v1191_v24 = vpop.permute.xlu1 %523 }
  0x91   : > { %v313_v28 = vpop.permute.xlu0 %312 }
  0x94   : > { %v1193_v25 = vpop.permute.xlu1 %527 }
  0x95   : > { %v318_v37 = vpop.permute.xlu0 %317 }
  0x99   : > { %v1195_v26 = vpop.permute.xlu1 %552 }
  0x9b   : > { %v549_v6 = vpop.permute.xlu0 %548 }
  0x9e   : > { %v1197_v27 = vpop.permute.xlu1 %452 }
  0xa0   : > { %v1272_v8 = vpop.permute.xlu0 %457 }
  0xa3   : > { %v1202_v33 = vpop.permute.xlu1 %465 }
  0xa5   : > { %v578_v10 = vpop.permute.xlu0 %577 }
  0xa7   : > { %v470_v48 = vpop.permute.xlu1 %469 }
  0xaa   : > { %v1278_v13 = vpop.permute.xlu0 %629 }
  0xac   : > { %v1270_v7 = vpop.permute.xlu1 %581 }
  0xaf   : > { %v495_v16 = vpop.permute.xlu0 %494 }
  0xb1   : > { %v1274_v9 = vpop.permute.xlu1 %625 }
  0xb4   : > { %v1286_v18 = vpop.permute.xlu0 %683 }
  0xb6   : > { %v1276_v12 = vpop.permute.xlu1 %650 }
  0xba   : > { %v1280_v14 = vpop.permute.xlu1 %654 }
  0xbf   : > { %v1282_v15 = vpop.permute.xlu1 %498 }
  0xc4   : > { %v1284_v17 = vpop.permute.xlu1 %679 }
  0xe2   : > { %v379_v29 = vpop.f32.mrf.mxu0 }
  0xe3   : > { %v380_v30 = vadd.f32 %v379_v29, %v313_v28 }
  0xe4   : > { %v381_v32 = vpop.f32.mrf.mxu0 }
  0xe5   : > { %v388_v36 = vmax.f32 %v380_v30, 0.0  ;;  %v382_v38 = vadd.f32 %v381_v32, %v313_v28 }
  0xe6   : > { %v383_v39 = vpop.f32.mrf.mxu0 }
  0xe7   : > { %v1210_v40 = vmin.f32 %v388_v36, 6.0  ;;  %v384_v41 = vadd.f32 %v383_v39, %v318_v37  ;;  %v389_v47 = vmax.f32 %v382_v38, 0.0 }
  0xe8   : > { %v385_v44 = vpop.f32.mrf.mxu0 }
  0xe9   : > { %v390_v45 = vmax.f32 %v384_v41, 0.0  ;;  %v386_v46 = vadd.f32 %v385_v44, %v318_v37  ;;  %636 = vrot.lane.b32.xlu0 %v1210_v40, %s1045_s23  ;;  %534 = vrot.lane.b32.xlu1 %v1210_v40, %s1046_s24  ;;  %v431_v51 = vmul.f32 %v424_v42, %v1210_v40  ;;  %v416_v52 = vmul.f32 %v409_v43, %v1210_v40 }
  0xea   : > { %v1224_v55 = vmin.f32 %v389_v47, 6.0  ;;  %v1299_v37 = vand.u32 127, %v329_v0 }
  0xeb   : > { %v394_v49 = vmin.f32 %v390_v45, 6.0  ;;  %v391_v50 = vmax.f32 %v386_v46, 0.0 }
  0xec   : > { %v417_v59 = vmul.f32 %v413_v58, %v1224_v55  ;;  %v432_v63 = vmul.f32 %v428_v62, %v1224_v55  ;;  %vm445_vm2 = vcmp.lt.s32.totalorder %v1299_v37, 1  ;;  %vm517_vm3 = vcmp.lt.s32.totalorder %v1299_v37, 17 }
  0xed   : > { %v395_v53 = vmin.f32 %v391_v50, 6.0  ;;  %v1220_v54 = vmul.f32 %v470_v48, %v394_v49  ;;  %563 = vrot.lane.b32.xlu0 %v431_v51, %s1047_s25  ;;  %509 = vrot.lane.b32.xlu1 %v416_v52, %s1048_s26  ;;  %v418_v60 = vmul.f32 %v409_v43, %v394_v49  ;;  %v433_v61 = vmul.f32 %v424_v42, %v394_v49 }
  0xee   : > { %v472_v43 = vmul.f32 %v1202_v33, %v1210_v40  ;;  %vm542_vm4 = vcmp.lt.s32.totalorder %v1299_v37, 16  ;;  %v473_v45 = vmul.f32 %v1202_v33, %v1224_v55  ;;  %vm571_vm5 = vcmp.lt.s32.totalorder %v1299_v37, 15 }
  0xef   : > { %v1226_v56 = vmul.f32 %v470_v48, %v395_v53  ;;  %v419_v1 = vmul.f32 %v413_v58, %v395_v53  ;;  %v434_v2 = vmul.f32 %v428_v62, %v395_v53  ;;  %vm488_vm6 = vcmp.lt.s32.totalorder %v1299_v37, 127 }
  0xf0   : > { %vm644_vm7 = vcmp.lt.s32.totalorder %v1299_v37, 112  ;;  %vm619_vm8 = vcmp.lt.s32.totalorder %v1299_v37, 113  ;;  %vm673_vm9 = vcmp.lt.s32.totalorder %v1299_v37, 111 }
  0xf1   : > { %611 = vrot.lane.b32.xlu0 %v416_v52, %s1049_s10  ;;  %538 = vrot.lane.b32.xlu1 %v1224_v55, %s1046_s24 }
  0xf5   : > { %640 = vrot.lane.b32.xlu0 %v1224_v55, %s1045_s23  ;;  %435 = vrot.lane.b32.xlu1 %v416_v52, %s1050_s12 }
  0xf9   : > { %480 = vrot.lane.b32.xlu0 %v431_v51, %s1051_s13  ;;  %513 = vrot.lane.b32.xlu1 %v417_v59, %s1048_s26 }
  0xfd   : > { %665 = vrot.lane.b32.xlu0 %v431_v51, %s1052_s17  ;;  %638 = vrot.lane.b32.xlu1 %v394_v49, %s1045_s23 }
 0x101   : > { %536 = vrot.lane.b32.xlu0 %v394_v49, %s1046_s24  ;;  %437 = vrot.lane.b32.xlu1 %v418_v60, %s1050_s12 }
 0x105   : > { %439 = vrot.lane.b32.xlu0 %v417_v59, %s1050_s12  ;;  %565 = vrot.lane.b32.xlu1 %v433_v61, %s1047_s25 }
 0x109   : > { %567 = vrot.lane.b32.xlu0 %v432_v63, %s1047_s25  ;;  %613 = vrot.lane.b32.xlu1 %v418_v60, %s1049_s10 }
 0x10d   : > { %615 = vrot.lane.b32.xlu0 %v417_v59, %s1049_s10  ;;  %642 = vrot.lane.b32.xlu1 %v395_v53, %s1045_s23 }
 0x111   : > { %484 = vrot.lane.b32.xlu0 %v432_v63, %s1051_s13  ;;  %482 = vrot.lane.b32.xlu1 %v433_v61, %s1051_s13 }
 0x115   : > { %511 = vrot.lane.b32.xlu0 %v418_v60, %s1048_s26  ;;  %667 = vrot.lane.b32.xlu1 %v433_v61, %s1052_s17 }
 0x119   : > { %540 = vrot.lane.b32.xlu0 %v395_v53, %s1046_s24  ;;  %441 = vrot.lane.b32.xlu1 %v419_v1, %s1050_s12  ;;  %s815_s24 = scalar_lea.hbm %s1513_s8, %s896_s19 }
 0x11d   : > { %515 = vrot.lane.b32.xlu0 %v419_v1, %s1048_s26  ;;  %569 = vrot.lane.b32.xlu1 %v434_v2, %s1047_s25 }
 0x121   : > { %669 = vrot.lane.b32.xlu0 %v432_v63, %s1052_s17  ;;  %617 = vrot.lane.b32.xlu1 %v419_v1, %s1049_s10  ;;  %s1053_s10 = smov [#allocation2]  }
 0x122   : > { %s977_s9 = sshll.u32 %s1053_s10, 4  ;;  %s978_s9 = int_to_ptr.vmem [resolvable:$false] %s977_s9 }
 0x123   : > { %s979_s12 = scalar_lea.vmem %s978_s9, 256 }
 0x125   : > { %717 = vperm.xlu0 %970, %v713_v3   ;;  %486 = vrot.lane.b32.xlu1 %v434_v2, %s1051_s13  ;;  %v887_v3 = vld [vmem:[%s1506_s1 + $0x2] ss:$4 sm:$0x3] }
 0x129   : > { %671 = vrot.lane.b32.xlu1 %v434_v2, %s1052_s17  ;;  %s296_s17 = sand.u32 1, %s1025_s28  }
 0x12a   : > { %s880_s18 = sshll.u32 %s296_s17, 3  ;;  %s803_s25 = scalar_lea.sflag [#allocation3], %s296_s17 }
 0x12b   : > { %s298_s20 = scalar_lea.vmem [#allocation2], %s880_s18 }
 0x12c   : > { %s817_s21 = sshll.u32 %s298_s20, 4  ;;  %s818_s21 = int_to_ptr.vmem [resolvable:$true] %s817_s21 }
 0x12d   : > { %722 = vperm.xlu1 %971, %v714_v4   ;;  %s973_s26 = scalar_lea.vmem %s818_s21, 128  ;;  %p980_p0 = scmp.lt.s32.totalorder %s818_s21, %s978_s9 }
 0x12e   : > { %p974_p11 = scmp.ne.s32.totalorder %s818_s21, %s973_s26  ;;  %p981_p1 = scmp.lt.s32.totalorder %s979_s12, %s973_s26 }
 0x130   : > { %p975_p12 = pnand %p974_p11, %p1137_p5  ;;  %p982_p2 = por %p981_p1, %p980_p0 }
 0x131   : > { %743 = vperm.xlu1 %971, %v740_v5  }
 0x132   : > { %p976_p13 = pneg %p975_p12 }
 0x134   : > { %p983_p3 = pnand %p982_p2, %p976_p13 }
 0x15b   : > { %v1288_v19 = vpop.permute.xlu0 %636  ;;  %v535_v20 = vpop.permute.xlu1 %534 }
 0x15f   : > { %v564_v21 = vpop.permute.xlu0 %563  ;;  %v510_v22 = vpop.permute.xlu1 %509 }
 0x163   : > { %v1290_v23 = vpop.permute.xlu0 %611  ;;  %v539_v28 = vpop.permute.xlu1 %538 }
 0x164   : > { %v543_v33 = vsel %vm542_vm4, %v535_v20, %v539_v28  ;;  %v545_v53 = vsel %vm542_vm4, %v539_v28, %v535_v20 }
 0x165   : > { %v555_v60 = vmul.f32 %v549_v6, %v545_v53  ;;  %v556_v61 = vmul.f32 %v549_v6, %v543_v33  ;;  %v1349_v6 = vrot.slane %v887_v3, %v1229_v57 }
 0x167   : > { %v1292_v29 = vpop.permute.xlu0 %640  ;;  %v436_v30 = vpop.permute.xlu1 %435 }
 0x16b   : > { %v481_v32 = vpop.permute.xlu0 %480  ;;  %v514_v34 = vpop.permute.xlu1 %513 }
 0x16c   : > { %v518_v40 = vsel %vm517_vm3, %v510_v22, %v514_v34  ;;  %v520_v48 = vsel %vm517_vm3, %v514_v34, %v510_v22 }
 0x16d   : > { %v530_v58 = vmul.f32 %v1191_v24, %v520_v48  ;;  %v531_v59 = vmul.f32 %v1191_v24, %v518_v40  ;;  %v1346_v24 = vrot.slane %v887_v3, %v1200_v31 }
 0x16f   : > { %v1294_v35 = vpop.permute.xlu0 %665  ;;  %v1296_v36 = vpop.permute.xlu1 %638  ;;  %v559_v4 = vadd.f32 %v555_v60, %v530_v58  ;;  %v560_v5 = vadd.f32 %v556_v61, %v531_v59 }
 0x173   : > { %v1301_v38 = vpop.permute.xlu0 %536  ;;  %v1303_v39 = vpop.permute.xlu1 %437 }
 0x177   : > { %v440_v41 = vpop.permute.xlu0 %439  ;;  %v1307_v42 = vpop.permute.xlu1 %565 }
 0x178   : > { %v446_v0 = vsel %vm445_vm2, %v436_v30, %v440_v41  ;;  %v448_v44 = vsel %vm445_vm2, %v440_v41, %v436_v30 }
 0x179   : > { %v460_v46 = vmul.f32 %v1197_v27, %v448_v44  ;;  %v461_v47 = vmul.f32 %v1197_v27, %v446_v0 }
 0x17b   : > { %v476_v49 = vadd.f32 %v472_v43, %v460_v46  ;;  %v477_v50 = vadd.f32 %v473_v45, %v461_v47  ;;  %v568_v51 = vpop.permute.xlu0 %567  ;;  %v1325_v52 = vpop.permute.xlu1 %613 }
 0x17c   : > { %v572_v27 = vsel %vm571_vm5, %v564_v21, %v568_v51  ;;  %v574_v55 = vsel %vm571_vm5, %v568_v51, %v564_v21 }
 0x17d   : > { %v584_v62 = vmul.f32 %v578_v10, %v574_v55  ;;  %v585_v63 = vmul.f32 %v578_v10, %v572_v27 }
 0x17f   : > { %v616_v1 = vpop.permute.xlu0 %615  ;;  %v1337_v2 = vpop.permute.xlu1 %642  ;;  %v588_v20 = vadd.f32 %v584_v62, %v559_v4  ;;  %v589_v21 = vadd.f32 %v585_v63, %v560_v5 }
 0x180   : > { %v620_v51 = vsel %vm619_vm8, %v1290_v23, %v616_v1  ;;  %v622_v33 = vsel %vm619_vm8, %v616_v1, %v1290_v23 }
 0x181   : > { %v603_v46 = vmul.f32 %v1346_v24, %v588_v20  ;;  %v604_v47 = vmul.f32 %v1349_v6, %v589_v21  ;;  %v633_v60 = vmul.f32 %v1274_v9, %v622_v33 }
 0x183   : > { %v485_v22 = vpop.permute.xlu0 %484  ;;  %v1343_v28 = vpop.permute.xlu1 %482 }
 0x184   : > { %v489_v10 = vsel %vm488_vm6, %v481_v32, %v485_v22  ;;  %v491_v30 = vsel %vm488_vm6, %v485_v22, %v481_v32  ;;  %v647_v32 = vsel %vm644_vm7, %v1292_v29, %v1288_v19 }
 0x185   : > { %v501_v34 = vmul.f32 %v495_v16, %v489_v10  ;;  %v502_v41 = vmul.f32 %v495_v16, %v491_v30  ;;  %v645_v16 = vsel %vm644_vm7, %v1288_v19, %v1292_v29  ;;  %v658_v59 = vmul.f32 %v1276_v12, %v647_v32 }
 0x186   : > { %v657_v58 = vmul.f32 %v1276_v12, %v645_v16  ;;  %v646_v16 = vsel %vm644_vm7, %v1296_v36, %v1337_v2 }
 0x187   : > { %v505_v43 = vadd.f32 %v501_v34, %v476_v49  ;;  %v506_v0 = vadd.f32 %v502_v41, %v477_v50  ;;  %v512_v44 = vpop.permute.xlu0 %511  ;;  %v1355_v45 = vpop.permute.xlu1 %667  ;;  %v662_v22 = vadd.f32 %v658_v59, %v633_v60 }
 0x189   : > { %v1361_v40 = vadd.f32 %v603_v46, %v505_v43  ;;  %v1363_v48 = vadd.f32 %v604_v47, %v506_v0 }
 0x18b   : > { %v541_v49 = vpop.permute.xlu0 %540  ;;  %v442_v50 = vpop.permute.xlu1 %441 }
 0x18c   : > { %v447_v53 = vsel %vm445_vm2, %v1303_v39, %v442_v50  ;;  %v449_v27 = vsel %vm445_vm2, %v442_v50, %v1303_v39  ;;  %v544_v19 = vsel %vm542_vm4, %v1301_v38, %v541_v49  ;;  %v546_v29 = vsel %vm542_vm4, %v541_v49, %v1301_v38 }
 0x18d   : > { %v462_v55 = vmul.f32 %v1272_v8, %v449_v27  ;;  %v463_v23 = vmul.f32 %v1272_v8, %v447_v53  ;;  %v632_v39 = vmul.f32 %v1274_v9, %v620_v51  ;;  %v888_v8 = vld [vmem:[%s1506_s1 + $0x3] ss:$4 sm:$0x3]  ;;  %v557_v1 = vmul.f32 %v1195_v26, %v546_v29 }
 0x18e   : > { %v558_v12 = vmul.f32 %v1195_v26, %v544_v19  ;;  %v698_v26 = vrot.slane %v888_v8, %v1200_v31  ;;  %v702_v20 = vrot.slane %v888_v8, %v1229_v57  ;;  %v659_v19 = vmul.f32 %v1280_v14, %v646_v16 }
 0x18f   : > { %v478_v61 = vadd.f32 %v1220_v54, %v462_v55  ;;  %v479_v62 = vadd.f32 %v1226_v56, %v463_v23  ;;  %v516_v63 = vpop.permute.xlu0 %515  ;;  %v570_v38 = vpop.permute.xlu1 %569  ;;  %v661_v21 = vadd.f32 %v657_v58, %v632_v39 }
 0x190   : > { %v519_v3 = vsel %vm517_vm3, %v512_v44, %v516_v63  ;;  %v521_v9 = vsel %vm517_vm3, %v516_v63, %v512_v44  ;;  %v573_v4 = vsel %vm571_vm5, %v1307_v42, %v570_v38  ;;  %v575_v5 = vsel %vm571_vm5, %v570_v38, %v1307_v42 }
 0x191   : > { %v532_v54 = vmul.f32 %v1193_v25, %v521_v9  ;;  %v533_v56 = vmul.f32 %v1193_v25, %v519_v3  ;;  %v586_v25 = vmul.f32 %v1270_v7, %v575_v5  ;;  %v587_v43 = vmul.f32 %v1270_v7, %v573_v4 }
 0x193   : > { %v561_v10 = vadd.f32 %v557_v1, %v532_v54  ;;  %v562_v30 = vadd.f32 %v558_v12, %v533_v56  ;;  %v670_v34 = vpop.permute.xlu0 %669  ;;  %v618_v41 = vpop.permute.xlu1 %617 }
 0x194   : > { %v674_v0 = vsel %vm673_vm9, %v1294_v35, %v670_v34  ;;  %v676_v31 = vsel %vm673_vm9, %v670_v34, %v1294_v35  ;;  %v621_v44 = vsel %vm619_vm8, %v1325_v52, %v618_v41  ;;  %v623_v7 = vsel %vm619_vm8, %v618_v41, %v1325_v52 }
 0x195   : > { %v686_v57 = vmul.f32 %v1284_v17, %v674_v0  ;;  %v687_v42 = vmul.f32 %v1284_v17, %v676_v31  ;;  %v590_v46 = vadd.f32 %v586_v25, %v561_v10  ;;  %v591_v47 = vadd.f32 %v587_v43, %v562_v30 }
 0x196   : > { %v648_v17 = vsel %vm644_vm7, %v1337_v2, %v1296_v36  ;;  %v634_v50 = vmul.f32 %v1278_v13, %v621_v44  ;;  %v635_v51 = vmul.f32 %v1278_v13, %v623_v7  ;;  %v791_v25 = vunpack.c.l.bf16 %v1175_v11 }
 0x197   : > { %v690_v35 = vadd.f32 %v686_v57, %v661_v21  ;;  %v691_v32 = vadd.f32 %v687_v42, %v662_v22  ;;  %v487_v49 = vpop.permute.xlu1 %486  ;;  %v660_v29 = vmul.f32 %v1280_v14, %v648_v17  ;;  %v605_v13 = vmul.f32 %v1346_v24, %v590_v46 }
 0x198   : > { %v490_v52 = vsel %vm488_vm6, %v1343_v28, %v487_v49  ;;  %v492_v33 = vsel %vm488_vm6, %v487_v49, %v1343_v28  ;;  %v606_v55 = vmul.f32 %v1349_v6, %v591_v47  ;;  %v663_v60 = vadd.f32 %v659_v19, %v634_v50 }
 0x199   : > { %v503_v53 = vmul.f32 %v1282_v15, %v490_v52  ;;  %v504_v27 = vmul.f32 %v1282_v15, %v492_v33  ;;  %v705_v36 = vmul.f32 %v698_v26, %v690_v35  ;;  %v706_v2 = vmul.f32 %v702_v20, %v691_v32 }
 0x19a   : > { %v664_v63 = vadd.f32 %v660_v29, %v635_v51  ;;  %v793_v57 = vcombine.high %v791_v25, %v791_v25 }
 0x19b   : > { %v507_v23 = vadd.f32 %v503_v53, %v478_v61  ;;  %v508_v58 = vadd.f32 %v504_v27, %v479_v62  ;;  %v672_v59 = vpop.permute.xlu1 %671  ;;  %v709_v39 = vadd.f32 %v705_v36, %v1361_v40  ;;  %v710_v28 = vadd.f32 %v706_v2, %v1363_v48 }
 0x19c   : > { %v675_v15 = vsel %vm673_vm9, %v1355_v45, %v672_v59  ;;  %v677_v14 = vsel %vm673_vm9, %v672_v59, %v1355_v45 }
 0x19d   : > { %v688_v24 = vmul.f32 %v1286_v18, %v675_v15  ;;  %v689_v6 = vmul.f32 %v1286_v18, %v677_v14  ;;  %v609_v61 = vadd.f32 %v605_v13, %v507_v23  ;;  %v610_v62 = vadd.f32 %v606_v55, %v508_v58 }
 0x19f   : > { %v692_v38 = vadd.f32 %v688_v24, %v663_v60  ;;  %v693_v40 = vadd.f32 %v689_v6, %v664_v63 }
 0x1a0   : > { %v718_v1 = vpop.permute.xlu0 %717 }
 0x1a1   : > { %v707_v8 = vmul.f32 %v698_v26, %v692_v38  ;;  %v708_v48 = vmul.f32 %v702_v20, %v693_v40  ;;  %v725_v9 = vadd.f32 %v718_v1, %v709_v39  ;;  %v726_v54 = vadd.f32 %v718_v1, %v710_v28  ;;  %v737_v20 = vld [vmem:[%s1511_s6] sm:$0x3] }
 0x1a3   : > { %v711_v12 = vadd.f32 %v707_v8, %v609_v61  ;;  %v712_v3 = vadd.f32 %v708_v48, %v610_v62  ;;  %v729_v4 = vmax.f32 %v725_v9, 0.0  ;;  %v730_v5 = vmax.f32 %v726_v54, 0.0 }
 0x1a5   : > { %v733_v18 = vmin.f32 %v729_v4, 6.0  ;;  %v734_v10 = vmin.f32 %v730_v5, 6.0 }
 0x1a8   : > { %v723_v56 = vpop.permute.xlu1 %722 }
 0x1a9   : > { %v727_v37 = vadd.f32 %v723_v56, %v711_v12  ;;  %v728_v45 = vadd.f32 %v723_v56, %v712_v3 }
 0x1ab   : > { %v731_v21 = vmax.f32 %v727_v37, 0.0  ;;  %v732_v22 = vmax.f32 %v728_v45, 0.0 }
 0x1ac   : > { %v744_v43 = vpop.permute.xlu1 %743 }
 0x1ad   : > { %v735_v30 = vmin.f32 %v731_v21, 6.0  ;;  %v736_v34 = vmin.f32 %v732_v22, 6.0 }
 0x1af   : > { %v739_v41 = vpack.c.bf16 %v736_v34, %v734_v10  ;;  %v738_v26 = vpack.c.bf16 %v735_v30, %v733_v18 }
 0x1b1   : > { %764 = vmatprep.subr.bf16.mxu1 %v739_v41 }
 0x1b2   : > { %765 = vmatpush1.bf16.msra.mxu1 %v738_v26 }
 0x1b5   : > { %889 = vmatmul.mubr.msk.bf16.vlgmr.msra.gmra.mxu1 %vm746_vm10, %v737_v20 }
 0x275   : > { %v784_v0 = vpop.f32.mrf.mxu1 }
 0x276   : > { %v785_v31 = vadd.f32 %v784_v0, %v744_v43 }
 0x277   : > { %v786_v42 = vpop.f32.mrf.mxu1 }
 0x278   : > { %v787_v44 = vadd.f32 %v786_v42, %v744_v43  ;;  %v795_v46 = vadd.f32 %v791_v25, %v785_v31 }
 0x279   : > { %v788_v7 = vpop.f32.mrf.mxu1 }
 0x27a   : > { %v796_v47 = vadd.f32 %v793_v57, %v787_v44 }
 0x27b   : > { %v789_v16 = vpop.f32.mrf.mxu1 }
 0x27c   : > { %v799_v17 = vcombine.low %v795_v46, %v796_v47 }
 0x27e   : > { %801 = vst [vmem:[%s298_s20] sm:$0xff] %v799_v17 }
 0x27f   : > { %986 = shalt.err (!%p983_p3)
}
 0x280   : > { %s987_s13 = scalar_lea.hbm %s815_s24, 128  ;;  %s991_s19 = scalar_lea.hbm %s1513_s8, 256 }
 0x281   : > { %p988_p4 = scmp.ne.s32.totalorder %s815_s24, %s987_s13  ;;  %p992_p9 = scmp.lt.s32.totalorder %s815_s24, %s1513_s8 }
 0x282   : > { %p993_p10 = scmp.lt.s32.totalorder %s991_s19, %s987_s13 }
 0x283   : > { %p989_p7 = pnand %p988_p4, %p1137_p5 }
 0x284   : > { %p994_p11 = por %p993_p10, %p992_p9 }
 0x285   : > { %p990_p8 = pneg %p989_p7 }
 0x287   : > { %p995_p12 = pnand %p994_p11, %p990_p8 }
 0x289   : > { %998 = shalt.err (!%p995_p12)
}
 0x28a   : > { %897 = dma.vmem_to_hbm [thread:$0]  (%p1137_p5), %s818_s21, 128, %s815_s24, %s803_s25  }
 0x28b PF: > { %p903_p13 = scmp.ge.s32.totalorder %s1033_s30, 2  ;;  %s829_s23 = sand.u32 1, %s1021_s27  }
 0x28c   : > { %s830_s26 = scalar_lea.sflag [#allocation3], %s829_s23 }
 0x28d   : > { %p900_p0 = pnand %p903_p13, %p1141_p6 }
 0x28f   : > { %p901_p1 = pneg %p900_p0 }
 0x291   : > { %1016 = dma.done.wait (%p901_p1), %s830_s26, 128  }
 0x292   : > { %1018 = vsyncadd (%p901_p1), %s830_s26, 4294967168  ;;  %p18_p2 = scmp.ge.s32.totalorder %s1124_s11, 4   ;;  %s1516_s27 = smov %s1025_s28 }
 0x293   : > { %s1517_s28 = smov %s1029_s29  ;;  %s1518_s29 = smov %s1135_s14 }
 0x294   : > { %s1519_s30 = smov %s1124_s11  ;;  %20 = sbr.rel (!%p18_p2) target bundleno = 3 (0x3), region = 90 }
 0x299   :  { %835 = vsyncpa [#allocation3], 1 }
 0x29a   :  { %837 = vsyncpa [#allocation3 + $0x1], 1 }

// kernel: tpu_custom_call.1
= control target key start
LH: loop header
LB: loop body
LE: loop exit
PB: predicated region body
PF: predicated region fallthrough
CT: control target
= control target key end

     0   :  { %13 = vsyncpa [#allocation3], 0  ;;  %s1505_s0 = inlined_call_operand.vmem [shape: bf16[2,4,256], index: 0, kind: input, shape index: {}]   ;;  %s1506_s1 = inlined_call_operand.vmem [shape: f32[4,256], index: 1, kind: input, shape index: {}]   ;;  %s1507_s2 = inlined_call_operand.vmem [shape: bf16[16,4], index: 2, kind: input, shape index: {}]   ;;  %s1508_s3 = inlined_call_operand.vmem [shape: f32[16,1], index: 3, kind: input, shape index: {}]   ;;  %s1509_s4 = inlined_call_operand.vmem [shape: f32[16,9], index: 4, kind: input, shape index: {}]   ;;  %s1510_s5 = inlined_call_operand.vmem [shape: f32[16,1], index: 5, kind: input, shape index: {}]   ;;  %s1511_s6 = inlined_call_operand.vmem [shape: bf16[4,16], index: 6, kind: input, shape index: {}]   ;;  %s1512_s7 = inlined_call_operand.vmem [shape: f32[4,1], index: 7, kind: input, shape index: {}]   ;;  %s1513_s8 = inlined_call_operand.hbm [shape: f32[2,4,256], index: 8, kind: output, shape index: {}]  }
   0x1   :  { %15 = vsyncpa [#allocation3 + $0x1], 0  ;;  %s1099_s27 = smov 0   ;;  %s1101_s28 = smov 0  }
   0x2   :  { %s1103_s29 = smov 0   ;;  %s1105_s30 = smov 0  }
   0x3 LB: > { %s1120_s9 = sadd.s32 4294967295, %s1033_s30   ;;  %s876_s10 = sadd.s32 4294967294, %s1033_s30   ;;  %s1033_s30 = sphi %s1105_s30, %s1519_s30   ;;  %s1029_s29 = sphi %s1103_s29, %s1518_s29   ;;  %s1025_s28 = sphi %s1101_s28, %s1517_s28   ;;  %s1021_s27 = sphi %s1099_s27, %s1516_s27  }
   0x4   : > { %s1124_s11 = sadd.s32 1, %s1033_s30   ;;  %s201_s12 = sadd.s32 1, %s1029_s29 }
   0x5   : > { %s198_s13 = ssub.s32 %s1033_s30, %s1124_s11  ;;  %p211_p0 = scmp.ne.s32.totalorder %s1029_s29, %s1025_s28 }
   0x6   : > { %p199_p1 = scmp.eq.s32.totalorder %s198_s13, 0  ;;  %p212_p2 = scmp.eq.s32.totalorder %s1120_s9, 1 }
   0x7   : > { %p217_p3 = scmp.ne.s32.totalorder %s1025_s28, %s1021_s27  ;;  %p218_p4 = scmp.eq.s32.totalorder %s876_s10, 1 }
   0x8   : > { %s1135_s14 = scalar_select %p199_p1, %s1029_s29, %s201_s12  }
   0x9   : > { %p1137_p5 = por %p212_p2, %p211_p0  ;;  %p1141_p6 = por %p218_p4, %p217_p3 }
   0xa   : > { %p879_p7 = scmp.ge.s32.totalorder %s1033_s30, 1  ;;  %p265_p8 = scmp.lt.s32.totalorder %s1033_s30, 3 }
   0xc   : > { %p266_p9 = pnand %p879_p7, %p265_p8 }
   0xd   : > { %p299_p10 = scmp.lt.s32.totalorder (!%p266_p9), %s1120_s9, 1  ;;  %s1045_s23 = smov (!%p266_p9), 112  }
   0xe   : > { %269 = sbr.rel (%p266_p9) target bundleno = 651 (0x28b), region = 52  ;;  %s1047_s25 = smov (!%p266_p9), 15  }
   0xf   : > { %s1048_s26 = smov (!%p266_p9), 17   ;;  %s1049_s10 = smov (!%p266_p9), 113  }
  0x10   : > { %s1050_s12 = smov (!%p266_p9), 1   ;;  %s1052_s17 = smov (!%p266_p9), 111  }
  0x13   : > { %v329_v0 = vlaneseq  ;;  %v1035_v1 = vmov 1983009808   ;;  %v1036_v3 = vmov 0   ;;  %v1153_v4 = vld [vmem:[%s1509_s4] sm:$0xff]  ;;  %s300_s19 = scalar_select %p299_p10, %s1120_s9, 1  ;;  %v397_v8 = vld [vmem:[%s1509_s4 + $0x8] sm:$0xff] }
  0x14   : > { %v327_v2 = vunpack.c.l.s4 %v1035_v1  ;;  %377 = vmatprep.mubr.bf16.mxu0 %v1036_v3  ;;  %955 = vset.pattern.permute.xlu1 %v1036_v3  ;;  %v308_v6 = vld [vmem:[%s1508_s3] sm:$0xff]  ;;  %v309_v9 = vld [vmem:[%s1508_s3 + $0x8] sm:$0xff]  ;;  %vm338_vm0 = vcmask 1041408   ;;  %v1037_v15 = vmov 1   ;;  %vm334_vm1 = vcmask 31744  }
  0x15   : > { %v1157_v5 = vshrl.u32 %v329_v0, 7  ;;  %523 = vperm.xlu1 %955, %v1153_v4   ;;  %954 = vset.pattern.permute.xlu0 %v1036_v3  ;;  %s895_s24 = sshll.u32 %s300_s19, 2  ;;  %v972_v16 = vld [vmem:[%s1507_s2] sm:$0xff]   ;;  %v1038_v17 = vmov 3   ;;  %v1039_v18 = vmov 4   ;;  %v1040_v19 = vmov 2  }
  0x16   : > { %v328_v7 = vunpack.c.0.s8 %v327_v2  ;;  %312 = vperm.xlu0 %954, %v308_v6   ;;  %782 = vmatprep.mubr.bf16.mxu1 %v1036_v3  ;;  %s303_s13 = scalar_lea.vmem %s1505_s0, %s895_s24  ;;  %v1041_v20 = vmov 6   ;;  %v1042_v21 = vmov 5   ;;  %v1043_v22 = vmov 8   ;;  %v886_v34 = vld [vmem:[%s1506_s1 + $0x1] ss:$4 sm:$0x3] }
  0x17   : > { %v1175_v11 = vld [vmem:[%s303_s13] sm:$0xf]  ;;  %v1044_v23 = vmov 7   ;;  %v1200_v31 = vsub.s32 0, %v1157_v5  ;;  %s1046_s24 = smov 16   ;;  %v1229_v57 = vsub.s32 1, %v1157_v5 }
  0x18   : > { %v331_v10 = vsub.s32 %v328_v7, %v1157_v5  ;;  %v398_v35 = vld [vmem:[%s1506_s1] ss:$4 sm:$0x3]  ;;  %s1051_s13 = smov 127   ;;  %vm746_vm10 = vcmask 130048   ;;  %s896_s19 = sshll.u32 %s1120_s9, 7 }
  0x19   : > { %527 = vperm.xlu1 %955, %v397_v8   ;;  %v424_v42 = vrot.slane %v886_v34, %v1200_v31  ;;  %v409_v43 = vrot.slane %v398_v35, %v1200_v31  ;;  %v413_v58 = vrot.slane %v398_v35, %v1229_v57  ;;  %v428_v62 = vrot.slane %v886_v34, %v1229_v57  ;;  %v740_v5 = vld [vmem:[%s1512_s7] sm:$0xf] }
  0x1a   : > { %v332_v12 = vrot.slane %v1175_v11, %v331_v10  ;;  %317 = vperm.xlu0 %954, %v309_v9  }
  0x1c   : > { %v333_v13 = vcombine.high %v332_v12, %v332_v12  ;;  %v340_v14 = vsel %vm338_vm0, %v332_v12, 0 }
  0x1d   : > { %957 = vset.pattern.permute.xlu1 %v1037_v15 }
  0x1e   : > { %884 = vmatprep.subr.msk.bf16.mxu0 %vm338_vm0, %v333_v13  ;;  %552 = vperm.xlu1 %957, %v397_v8  }
  0x1f   : > { %360 = vmatpush1.bf16.msra.mxu0 %v340_v14  ;;  %956 = vset.pattern.permute.xlu0 %v1037_v15 }
  0x20   : > { %548 = vperm.xlu0 %956, %v1153_v4  }
  0x22   : > { %885 = vmatmul.mubr.msk.bf16.vlgmr.msra.gmra.mxu0 %vm334_vm1, %v972_v16  ;;  %958 = vset.pattern.permute.xlu1 %v1038_v17 }
  0x23   : > { %452 = vperm.xlu1 %958, %v1153_v4  }
  0x24   : > { %959 = vset.pattern.permute.xlu0 %v1038_v17 }
  0x25   : > { %457 = vperm.xlu0 %959, %v397_v8  }
  0x27   : > { %960 = vset.pattern.permute.xlu1 %v1039_v18 }
  0x28   : > { %465 = vperm.xlu1 %960, %v1153_v4  }
  0x29   : > { %961 = vset.pattern.permute.xlu0 %v1040_v19 }
  0x2a   : > { %577 = vperm.xlu0 %961, %v1153_v4  }
  0x2c   : > { %469 = vperm.xlu1 %960, %v397_v8  }
  0x2e   : > { %964 = vset.pattern.permute.xlu0 %v1041_v20 }
  0x2f   : > { %629 = vperm.xlu0 %964, %v397_v8  }
  0x30   : > { %962 = vset.pattern.permute.xlu1 %v1040_v19 }
  0x31   : > { %581 = vperm.xlu1 %962, %v397_v8  }
  0x33   : > { %966 = vset.pattern.permute.xlu0 %v1042_v21 }
  0x34   : > { %494 = vperm.xlu0 %966, %v1153_v4  }
  0x35   : > { %963 = vset.pattern.permute.xlu1 %v1041_v20 }
  0x36   : > { %625 = vperm.xlu1 %963, %v1153_v4  }
  0x38   : > { %969 = vset.pattern.permute.xlu0 %v1043_v22 }
  0x39   : > { %683 = vperm.xlu0 %969, %v397_v8  }
  0x3a   : > { %965 = vset.pattern.permute.xlu1 %v1044_v23 }
  0x3b   : > { %650 = vperm.xlu1 %965, %v1153_v4  }
  0x3d   : > { %970 = vset.pattern.permute.xlu0 %v1036_v3 }
  0x3f   : > { %654 = vperm.xlu1 %965, %v397_v8  }
  0x43   : > { %967 = vset.pattern.permute.xlu1 %v1042_v21 }
  0x44   : > { %498 = vperm.xlu1 %967, %v397_v8  }
  0x48   : > { %968 = vset.pattern.permute.xlu1 %v1043_v22 }
  0x49   : > { %679 = vperm.xlu1 %968, %v1153_v4   ;;  %v714_v4 = vld [vmem:[%s1510_s5 + $0x8] sm:$0xff] }
  0x4d   : > { %971 = vset.pattern.permute.xlu1 %v1036_v3  ;;  %v713_v3 = vld [vmem:[%s1510_s5] sm:$0xff] }
  0x90   : > { %v1191_v24 = vpop.permute.xlu1 %523 }
  0x91   : > { %v313_v28 = vpop.permute.xlu0 %312 }
  0x94   : > { %v1193_v25 = vpop.permute.xlu1 %527 }
  0x95   : > { %v318_v37 = vpop.permute.xlu0 %317 }
  0x99   : > { %v1195_v26 = vpop.permute.xlu1 %552 }
  0x9b   : > { %v549_v6 = vpop.permute.xlu0 %548 }
  0x9e   : > { %v1197_v27 = vpop.permute.xlu1 %452 }
  0xa0   : > { %v1272_v8 = vpop.permute.xlu0 %457 }
  0xa3   : > { %v1202_v33 = vpop.permute.xlu1 %465 }
  0xa5   : > { %v578_v10 = vpop.permute.xlu0 %577 }
  0xa7   : > { %v470_v48 = vpop.permute.xlu1 %469 }
  0xaa   : > { %v1278_v13 = vpop.permute.xlu0 %629 }
  0xac   : > { %v1270_v7 = vpop.permute.xlu1 %581 }
  0xaf   : > { %v495_v16 = vpop.permute.xlu0 %494 }
  0xb1   : > { %v1274_v9 = vpop.permute.xlu1 %625 }
  0xb4   : > { %v1286_v18 = vpop.permute.xlu0 %683 }
  0xb6   : > { %v1276_v12 = vpop.permute.xlu1 %650 }
  0xba   : > { %v1280_v14 = vpop.permute.xlu1 %654 }
  0xbf   : > { %v1282_v15 = vpop.permute.xlu1 %498 }
  0xc4   : > { %v1284_v17 = vpop.permute.xlu1 %679 }
  0xe2   : > { %v379_v29 = vpop.f32.mrf.mxu0 }
  0xe3   : > { %v380_v30 = vadd.f32 %v379_v29, %v313_v28 }
  0xe4   : > { %v381_v32 = vpop.f32.mrf.mxu0 }
  0xe5   : > { %v388_v36 = vmax.f32 %v380_v30, 0.0  ;;  %v382_v38 = vadd.f32 %v381_v32, %v313_v28 }
  0xe6   : > { %v383_v39 = vpop.f32.mrf.mxu0 }
  0xe7   : > { %v1210_v40 = vmin.f32 %v388_v36, 6.0  ;;  %v384_v41 = vadd.f32 %v383_v39, %v318_v37  ;;  %v389_v47 = vmax.f32 %v382_v38, 0.0 }
  0xe8   : > { %v385_v44 = vpop.f32.mrf.mxu0 }
  0xe9   : > { %v390_v45 = vmax.f32 %v384_v41, 0.0  ;;  %v386_v46 = vadd.f32 %v385_v44, %v318_v37  ;;  %636 = vrot.lane.b32.xlu0 %v1210_v40, %s1045_s23  ;;  %534 = vrot.lane.b32.xlu1 %v1210_v40, %s1046_s24  ;;  %v431_v51 = vmul.f32 %v424_v42, %v1210_v40  ;;  %v416_v52 = vmul.f32 %v409_v43, %v1210_v40 }
  0xea   : > { %v1224_v55 = vmin.f32 %v389_v47, 6.0  ;;  %v1299_v37 = vand.u32 127, %v329_v0 }
  0xeb   : > { %v394_v49 = vmin.f32 %v390_v45, 6.0  ;;  %v391_v50 = vmax.f32 %v386_v46, 0.0 }
  0xec   : > { %v417_v59 = vmul.f32 %v413_v58, %v1224_v55  ;;  %v432_v63 = vmul.f32 %v428_v62, %v1224_v55  ;;  %vm445_vm2 = vcmp.lt.s32.totalorder %v1299_v37, 1  ;;  %vm517_vm3 = vcmp.lt.s32.totalorder %v1299_v37, 17 }
  0xed   : > { %v395_v53 = vmin.f32 %v391_v50, 6.0  ;;  %v1220_v54 = vmul.f32 %v470_v48, %v394_v49  ;;  %563 = vrot.lane.b32.xlu0 %v431_v51, %s1047_s25  ;;  %509 = vrot.lane.b32.xlu1 %v416_v52, %s1048_s26  ;;  %v418_v60 = vmul.f32 %v409_v43, %v394_v49  ;;  %v433_v61 = vmul.f32 %v424_v42, %v394_v49 }
  0xee   : > { %v472_v43 = vmul.f32 %v1202_v33, %v1210_v40  ;;  %vm542_vm4 = vcmp.lt.s32.totalorder %v1299_v37, 16  ;;  %v473_v45 = vmul.f32 %v1202_v33, %v1224_v55  ;;  %vm571_vm5 = vcmp.lt.s32.totalorder %v1299_v37, 15 }
  0xef   : > { %v1226_v56 = vmul.f32 %v470_v48, %v395_v53  ;;  %v419_v1 = vmul.f32 %v413_v58, %v395_v53  ;;  %v434_v2 = vmul.f32 %v428_v62, %v395_v53  ;;  %vm488_vm6 = vcmp.lt.s32.totalorder %v1299_v37, 127 }
  0xf0   : > { %vm644_vm7 = vcmp.lt.s32.totalorder %v1299_v37, 112  ;;  %vm619_vm8 = vcmp.lt.s32.totalorder %v1299_v37, 113  ;;  %vm673_vm9 = vcmp.lt.s32.totalorder %v1299_v37, 111 }
  0xf1   : > { %611 = vrot.lane.b32.xlu0 %v416_v52, %s1049_s10  ;;  %538 = vrot.lane.b32.xlu1 %v1224_v55, %s1046_s24 }
  0xf5   : > { %640 = vrot.lane.b32.xlu0 %v1224_v55, %s1045_s23  ;;  %435 = vrot.lane.b32.xlu1 %v416_v52, %s1050_s12 }
  0xf9   : > { %480 = vrot.lane.b32.xlu0 %v431_v51, %s1051_s13  ;;  %513 = vrot.lane.b32.xlu1 %v417_v59, %s1048_s26 }
  0xfd   : > { %665 = vrot.lane.b32.xlu0 %v431_v51, %s1052_s17  ;;  %638 = vrot.lane.b32.xlu1 %v394_v49, %s1045_s23 }
 0x101   : > { %536 = vrot.lane.b32.xlu0 %v394_v49, %s1046_s24  ;;  %437 = vrot.lane.b32.xlu1 %v418_v60, %s1050_s12 }
 0x105   : > { %439 = vrot.lane.b32.xlu0 %v417_v59, %s1050_s12  ;;  %565 = vrot.lane.b32.xlu1 %v433_v61, %s1047_s25 }
 0x109   : > { %567 = vrot.lane.b32.xlu0 %v432_v63, %s1047_s25  ;;  %613 = vrot.lane.b32.xlu1 %v418_v60, %s1049_s10 }
 0x10d   : > { %615 = vrot.lane.b32.xlu0 %v417_v59, %s1049_s10  ;;  %642 = vrot.lane.b32.xlu1 %v395_v53, %s1045_s23 }
 0x111   : > { %484 = vrot.lane.b32.xlu0 %v432_v63, %s1051_s13  ;;  %482 = vrot.lane.b32.xlu1 %v433_v61, %s1051_s13 }
 0x115   : > { %511 = vrot.lane.b32.xlu0 %v418_v60, %s1048_s26  ;;  %667 = vrot.lane.b32.xlu1 %v433_v61, %s1052_s17 }
 0x119   : > { %540 = vrot.lane.b32.xlu0 %v395_v53, %s1046_s24  ;;  %441 = vrot.lane.b32.xlu1 %v419_v1, %s1050_s12  ;;  %s815_s24 = scalar_lea.hbm %s1513_s8, %s896_s19 }
 0x11d   : > { %515 = vrot.lane.b32.xlu0 %v419_v1, %s1048_s26  ;;  %569 = vrot.lane.b32.xlu1 %v434_v2, %s1047_s25 }
 0x121   : > { %669 = vrot.lane.b32.xlu0 %v432_v63, %s1052_s17  ;;  %617 = vrot.lane.b32.xlu1 %v419_v1, %s1049_s10  ;;  %s1053_s10 = smov [#allocation2]  }
 0x122   : > { %s977_s9 = sshll.u32 %s1053_s10, 4  ;;  %s978_s9 = int_to_ptr.vmem [resolvable:$false] %s977_s9 }
 0x123   : > { %s979_s12 = scalar_lea.vmem %s978_s9, 256 }
 0x125   : > { %717 = vperm.xlu0 %970, %v713_v3   ;;  %486 = vrot.lane.b32.xlu1 %v434_v2, %s1051_s13  ;;  %v887_v3 = vld [vmem:[%s1506_s1 + $0x2] ss:$4 sm:$0x3] }
 0x129   : > { %671 = vrot.lane.b32.xlu1 %v434_v2, %s1052_s17  ;;  %s296_s17 = sand.u32 1, %s1025_s28  }
 0x12a   : > { %s880_s18 = sshll.u32 %s296_s17, 3  ;;  %s803_s25 = scalar_lea.sflag [#allocation3], %s296_s17 }
 0x12b   : > { %s298_s20 = scalar_lea.vmem [#allocation2], %s880_s18 }
 0x12c   : > { %s817_s21 = sshll.u32 %s298_s20, 4  ;;  %s818_s21 = int_to_ptr.vmem [resolvable:$true] %s817_s21 }
 0x12d   : > { %722 = vperm.xlu1 %971, %v714_v4   ;;  %s973_s26 = scalar_lea.vmem %s818_s21, 128  ;;  %p980_p0 = scmp.lt.s32.totalorder %s818_s21, %s978_s9 }
 0x12e   : > { %p974_p11 = scmp.ne.s32.totalorder %s818_s21, %s973_s26  ;;  %p981_p1 = scmp.lt.s32.totalorder %s979_s12, %s973_s26 }
 0x130   : > { %p975_p12 = pnand %p974_p11, %p1137_p5  ;;  %p982_p2 = por %p981_p1, %p980_p0 }
 0x131   : > { %743 = vperm.xlu1 %971, %v740_v5  }
 0x132   : > { %p976_p13 = pneg %p975_p12 }
 0x134   : > { %p983_p3 = pnand %p982_p2, %p976_p13 }
 0x15b   : > { %v1288_v19 = vpop.permute.xlu0 %636  ;;  %v535_v20 = vpop.permute.xlu1 %534 }
 0x15f   : > { %v564_v21 = vpop.permute.xlu0 %563  ;;  %v510_v22 = vpop.permute.xlu1 %509 }
 0x163   : > { %v1290_v23 = vpop.permute.xlu0 %611  ;;  %v539_v28 = vpop.permute.xlu1 %538 }
 0x164   : > { %v543_v33 = vsel %vm542_vm4, %v535_v20, %v539_v28  ;;  %v545_v53 = vsel %vm542_vm4, %v539_v28, %v535_v20 }
 0x165   : > { %v555_v60 = vmul.f32 %v549_v6, %v545_v53  ;;  %v556_v61 = vmul.f32 %v549_v6, %v543_v33  ;;  %v1349_v6 = vrot.slane %v887_v3, %v1229_v57 }
 0x167   : > { %v1292_v29 = vpop.permute.xlu0 %640  ;;  %v436_v30 = vpop.permute.xlu1 %435 }
 0x16b   : > { %v481_v32 = vpop.permute.xlu0 %480  ;;  %v514_v34 = vpop.permute.xlu1 %513 }
 0x16c   : > { %v518_v40 = vsel %vm517_vm3, %v510_v22, %v514_v34  ;;  %v520_v48 = vsel %vm517_vm3, %v514_v34, %v510_v22 }
 0x16d   : > { %v530_v58 = vmul.f32 %v1191_v24, %v520_v48  ;;  %v531_v59 = vmul.f32 %v1191_v24, %v518_v40  ;;  %v1346_v24 = vrot.slane %v887_v3, %v1200_v31 }
 0x16f   : > { %v1294_v35 = vpop.permute.xlu0 %665  ;;  %v1296_v36 = vpop.permute.xlu1 %638  ;;  %v559_v4 = vadd.f32 %v555_v60, %v530_v58  ;;  %v560_v5 = vadd.f32 %v556_v61, %v531_v59 }
 0x173   : > { %v1301_v38 = vpop.permute.xlu0 %536  ;;  %v1303_v39 = vpop.permute.xlu1 %437 }
 0x177   : > { %v440_v41 = vpop.permute.xlu0 %439  ;;  %v1307_v42 = vpop.permute.xlu1 %565 }
 0x178   : > { %v446_v0 = vsel %vm445_vm2, %v436_v30, %v440_v41  ;;  %v448_v44 = vsel %vm445_vm2, %v440_v41, %v436_v30 }
 0x179   : > { %v460_v46 = vmul.f32 %v1197_v27, %v448_v44  ;;  %v461_v47 = vmul.f32 %v1197_v27, %v446_v0 }
 0x17b   : > { %v476_v49 = vadd.f32 %v472_v43, %v460_v46  ;;  %v477_v50 = vadd.f32 %v473_v45, %v461_v47  ;;  %v568_v51 = vpop.permute.xlu0 %567  ;;  %v1325_v52 = vpop.permute.xlu1 %613 }
 0x17c   : > { %v572_v27 = vsel %vm571_vm5, %v564_v21, %v568_v51  ;;  %v574_v55 = vsel %vm571_vm5, %v568_v51, %v564_v21 }
 0x17d   : > { %v584_v62 = vmul.f32 %v578_v10, %v574_v55  ;;  %v585_v63 = vmul.f32 %v578_v10, %v572_v27 }
 0x17f   : > { %v616_v1 = vpop.permute.xlu0 %615  ;;  %v1337_v2 = vpop.permute.xlu1 %642  ;;  %v588_v20 = vadd.f32 %v584_v62, %v559_v4  ;;  %v589_v21 = vadd.f32 %v585_v63, %v560_v5 }
 0x180   : > { %v620_v51 = vsel %vm619_vm8, %v1290_v23, %v616_v1  ;;  %v622_v33 = vsel %vm619_vm8, %v616_v1, %v1290_v23 }
 0x181   : > { %v603_v46 = vmul.f32 %v1346_v24, %v588_v20  ;;  %v604_v47 = vmul.f32 %v1349_v6, %v589_v21  ;;  %v633_v60 = vmul.f32 %v1274_v9, %v622_v33 }
 0x183   : > { %v485_v22 = vpop.permute.xlu0 %484  ;;  %v1343_v28 = vpop.permute.xlu1 %482 }
 0x184   : > { %v489_v10 = vsel %vm488_vm6, %v481_v32, %v485_v22  ;;  %v491_v30 = vsel %vm488_vm6, %v485_v22, %v481_v32  ;;  %v647_v32 = vsel %vm644_vm7, %v1292_v29, %v1288_v19 }
 0x185   : > { %v501_v34 = vmul.f32 %v495_v16, %v489_v10  ;;  %v502_v41 = vmul.f32 %v495_v16, %v491_v30  ;;  %v645_v16 = vsel %vm644_vm7, %v1288_v19, %v1292_v29  ;;  %v658_v59 = vmul.f32 %v1276_v12, %v647_v32 }
 0x186   : > { %v657_v58 = vmul.f32 %v1276_v12, %v645_v16  ;;  %v646_v16 = vsel %vm644_vm7, %v1296_v36, %v1337_v2 }
 0x187   : > { %v505_v43 = vadd.f32 %v501_v34, %v476_v49  ;;  %v506_v0 = vadd.f32 %v502_v41, %v477_v50  ;;  %v512_v44 = vpop.permute.xlu0 %511  ;;  %v1355_v45 = vpop.permute.xlu1 %667  ;;  %v662_v22 = vadd.f32 %v658_v59, %v633_v60 }
 0x189   : > { %v1361_v40 = vadd.f32 %v603_v46, %v505_v43  ;;  %v1363_v48 = vadd.f32 %v604_v47, %v506_v0 }
 0x18b   : > { %v541_v49 = vpop.permute.xlu0 %540  ;;  %v442_v50 = vpop.permute.xlu1 %441 }
 0x18c   : > { %v447_v53 = vsel %vm445_vm2, %v1303_v39, %v442_v50  ;;  %v449_v27 = vsel %vm445_vm2, %v442_v50, %v1303_v39  ;;  %v544_v19 = vsel %vm542_vm4, %v1301_v38, %v541_v49  ;;  %v546_v29 = vsel %vm542_vm4, %v541_v49, %v1301_v38 }
 0x18d   : > { %v462_v55 = vmul.f32 %v1272_v8, %v449_v27  ;;  %v463_v23 = vmul.f32 %v1272_v8, %v447_v53  ;;  %v632_v39 = vmul.f32 %v1274_v9, %v620_v51  ;;  %v888_v8 = vld [vmem:[%s1506_s1 + $0x3] ss:$4 sm:$0x3]  ;;  %v557_v1 = vmul.f32 %v1195_v26, %v546_v29 }
 0x18e   : > { %v558_v12 = vmul.f32 %v1195_v26, %v544_v19  ;;  %v698_v26 = vrot.slane %v888_v8, %v1200_v31  ;;  %v702_v20 = vrot.slane %v888_v8, %v1229_v57  ;;  %v659_v19 = vmul.f32 %v1280_v14, %v646_v16 }
 0x18f   : > { %v478_v61 = vadd.f32 %v1220_v54, %v462_v55  ;;  %v479_v62 = vadd.f32 %v1226_v56, %v463_v23  ;;  %v516_v63 = vpop.permute.xlu0 %515  ;;  %v570_v38 = vpop.permute.xlu1 %569  ;;  %v661_v21 = vadd.f32 %v657_v58, %v632_v39 }
 0x190   : > { %v519_v3 = vsel %vm517_vm3, %v512_v44, %v516_v63  ;;  %v521_v9 = vsel %vm517_vm3, %v516_v63, %v512_v44  ;;  %v573_v4 = vsel %vm571_vm5, %v1307_v42, %v570_v38  ;;  %v575_v5 = vsel %vm571_vm5, %v570_v38, %v1307_v42 }
 0x191   : > { %v532_v54 = vmul.f32 %v1193_v25, %v521_v9  ;;  %v533_v56 = vmul.f32 %v1193_v25, %v519_v3  ;;  %v586_v25 = vmul.f32 %v1270_v7, %v575_v5  ;;  %v587_v43 = vmul.f32 %v1270_v7, %v573_v4 }
 0x193   : > { %v561_v10 = vadd.f32 %v557_v1, %v532_v54  ;;  %v562_v30 = vadd.f32 %v558_v12, %v533_v56  ;;  %v670_v34 = vpop.permute.xlu0 %669  ;;  %v618_v41 = vpop.permute.xlu1 %617 }
 0x194   : > { %v674_v0 = vsel %vm673_vm9, %v1294_v35, %v670_v34  ;;  %v676_v31 = vsel %vm673_vm9, %v670_v34, %v1294_v35  ;;  %v621_v44 = vsel %vm619_vm8, %v1325_v52, %v618_v41  ;;  %v623_v7 = vsel %vm619_vm8, %v618_v41, %v1325_v52 }
 0x195   : > { %v686_v57 = vmul.f32 %v1284_v17, %v674_v0  ;;  %v687_v42 = vmul.f32 %v1284_v17, %v676_v31  ;;  %v590_v46 = vadd.f32 %v586_v25, %v561_v10  ;;  %v591_v47 = vadd.f32 %v587_v43, %v562_v30 }
 0x196   : > { %v648_v17 = vsel %vm644_vm7, %v1337_v2, %v1296_v36  ;;  %v634_v50 = vmul.f32 %v1278_v13, %v621_v44  ;;  %v635_v51 = vmul.f32 %v1278_v13, %v623_v7  ;;  %v791_v25 = vunpack.c.l.bf16 %v1175_v11 }
 0x197   : > { %v690_v35 = vadd.f32 %v686_v57, %v661_v21  ;;  %v691_v32 = vadd.f32 %v687_v42, %v662_v22  ;;  %v487_v49 = vpop.permute.xlu1 %486  ;;  %v660_v29 = vmul.f32 %v1280_v14, %v648_v17  ;;  %v605_v13 = vmul.f32 %v1346_v24, %v590_v46 }
 0x198   : > { %v490_v52 = vsel %vm488_vm6, %v1343_v28, %v487_v49  ;;  %v492_v33 = vsel %vm488_vm6, %v487_v49, %v1343_v28  ;;  %v606_v55 = vmul.f32 %v1349_v6, %v591_v47  ;;  %v663_v60 = vadd.f32 %v659_v19, %v634_v50 }
 0x199   : > { %v503_v53 = vmul.f32 %v1282_v15, %v490_v52  ;;  %v504_v27 = vmul.f32 %v1282_v15, %v492_v33  ;;  %v705_v36 = vmul.f32 %v698_v26, %v690_v35  ;;  %v706_v2 = vmul.f32 %v702_v20, %v691_v32 }
 0x19a   : > { %v664_v63 = vadd.f32 %v660_v29, %v635_v51  ;;  %v793_v57 = vcombine.high %v791_v25, %v791_v25 }
 0x19b   : > { %v507_v23 = vadd.f32 %v503_v53, %v478_v61  ;;  %v508_v58 = vadd.f32 %v504_v27, %v479_v62  ;;  %v672_v59 = vpop.permute.xlu1 %671  ;;  %v709_v39 = vadd.f32 %v705_v36, %v1361_v40  ;;  %v710_v28 = vadd.f32 %v706_v2, %v1363_v48 }
 0x19c   : > { %v675_v15 = vsel %vm673_vm9, %v1355_v45, %v672_v59  ;;  %v677_v14 = vsel %vm673_vm9, %v672_v59, %v1355_v45 }
 0x19d   : > { %v688_v24 = vmul.f32 %v1286_v18, %v675_v15  ;;  %v689_v6 = vmul.f32 %v1286_v18, %v677_v14  ;;  %v609_v61 = vadd.f32 %v605_v13, %v507_v23  ;;  %v610_v62 = vadd.f32 %v606_v55, %v508_v58 }
 0x19f   : > { %v692_v38 = vadd.f32 %v688_v24, %v663_v60  ;;  %v693_v40 = vadd.f32 %v689_v6, %v664_v63 }
 0x1a0   : > { %v718_v1 = vpop.permute.xlu0 %717 }
 0x1a1   : > { %v707_v8 = vmul.f32 %v698_v26, %v692_v38  ;;  %v708_v48 = vmul.f32 %v702_v20, %v693_v40  ;;  %v725_v9 = vadd.f32 %v718_v1, %v709_v39  ;;  %v726_v54 = vadd.f32 %v718_v1, %v710_v28  ;;  %v737_v20 = vld [vmem:[%s1511_s6] sm:$0x3] }
 0x1a3   : > { %v711_v12 = vadd.f32 %v707_v8, %v609_v61  ;;  %v712_v3 = vadd.f32 %v708_v48, %v610_v62  ;;  %v729_v4 = vmax.f32 %v725_v9, 0.0  ;;  %v730_v5 = vmax.f32 %v726_v54, 0.0 }
 0x1a5   : > { %v733_v18 = vmin.f32 %v729_v4, 6.0  ;;  %v734_v10 = vmin.f32 %v730_v5, 6.0 }
 0x1a8   : > { %v723_v56 = vpop.permute.xlu1 %722 }
 0x1a9   : > { %v727_v37 = vadd.f32 %v723_v56, %v711_v12  ;;  %v728_v45 = vadd.f32 %v723_v56, %v712_v3 }
 0x1ab   : > { %v731_v21 = vmax.f32 %v727_v37, 0.0  ;;  %v732_v22 = vmax.f32 %v728_v45, 0.0 }
 0x1ac   : > { %v744_v43 = vpop.permute.xlu1 %743 }
 0x1ad   : > { %v735_v30 = vmin.f32 %v731_v21, 6.0  ;;  %v736_v34 = vmin.f32 %v732_v22, 6.0 }
 0x1af   : > { %v739_v41 = vpack.c.bf16 %v736_v34, %v734_v10  ;;  %v738_v26 = vpack.c.bf16 %v735_v30, %v733_v18 }
 0x1b1   : > { %764 = vmatprep.subr.bf16.mxu1 %v739_v41 }
 0x1b2   : > { %765 = vmatpush1.bf16.msra.mxu1 %v738_v26 }
 0x1b5   : > { %889 = vmatmul.mubr.msk.bf16.vlgmr.msra.gmra.mxu1 %vm746_vm10, %v737_v20 }
 0x275   : > { %v784_v0 = vpop.f32.mrf.mxu1 }
 0x276   : > { %v785_v31 = vadd.f32 %v784_v0, %v744_v43 }
 0x277   : > { %v786_v42 = vpop.f32.mrf.mxu1 }
 0x278   : > { %v787_v44 = vadd.f32 %v786_v42, %v744_v43  ;;  %v795_v46 = vadd.f32 %v791_v25, %v785_v31 }
 0x279   : > { %v788_v7 = vpop.f32.mrf.mxu1 }
 0x27a   : > { %v796_v47 = vadd.f32 %v793_v57, %v787_v44 }
 0x27b   : > { %v789_v16 = vpop.f32.mrf.mxu1 }
 0x27c   : > { %v799_v17 = vcombine.low %v795_v46, %v796_v47 }
 0x27e   : > { %801 = vst [vmem:[%s298_s20] sm:$0xff] %v799_v17 }
 0x27f   : > { %986 = shalt.err (!%p983_p3)
}
 0x280   : > { %s987_s13 = scalar_lea.hbm %s815_s24, 128  ;;  %s991_s19 = scalar_lea.hbm %s1513_s8, 256 }
 0x281   : > { %p988_p4 = scmp.ne.s32.totalorder %s815_s24, %s987_s13  ;;  %p992_p9 = scmp.lt.s32.totalorder %s815_s24, %s1513_s8 }
 0x282   : > { %p993_p10 = scmp.lt.s32.totalorder %s991_s19, %s987_s13 }
 0x283   : > { %p989_p7 = pnand %p988_p4, %p1137_p5 }
 0x284   : > { %p994_p11 = por %p993_p10, %p992_p9 }
 0x285   : > { %p990_p8 = pneg %p989_p7 }
 0x287   : > { %p995_p12 = pnand %p994_p11, %p990_p8 }
 0x289   : > { %998 = shalt.err (!%p995_p12)
}
 0x28a   : > { %897 = dma.vmem_to_hbm [thread:$0]  (%p1137_p5), %s818_s21, 128, %s815_s24, %s803_s25  }
 0x28b PF: > { %p903_p13 = scmp.ge.s32.totalorder %s1033_s30, 2  ;;  %s829_s23 = sand.u32 1, %s1021_s27  }
 0x28c   : > { %s830_s26 = scalar_lea.sflag [#allocation3], %s829_s23 }
 0x28d   : > { %p900_p0 = pnand %p903_p13, %p1141_p6 }
 0x28f   : > { %p901_p1 = pneg %p900_p0 }
 0x291   : > { %1016 = dma.done.wait (%p901_p1), %s830_s26, 128  }
 0x292   : > { %1018 = vsyncadd (%p901_p1), %s830_s26, 4294967168  ;;  %p18_p2 = scmp.ge.s32.totalorder %s1124_s11, 4   ;;  %s1516_s27 = smov %s1025_s28 }
 0x293   : > { %s1517_s28 = smov %s1029_s29  ;;  %s1518_s29 = smov %s1135_s14 }
 0x294   : > { %s1519_s30 = smov %s1124_s11  ;;  %20 = sbr.rel (!%p18_p2) target bundleno = 3 (0x3), region = 90 }
 0x299   :  { %835 = vsyncpa [#allocation3], 1 }
 0x29a   :  { %837 = vsyncpa [#allocation3 + $0x1], 1 }

</bundles_post_ra>
